<compile_context>
chip_gen: v7x
topology: tpu7x:2x2x1
jax: 0.10.0
libtpu: 0.0.40
codegen_flags: <defaults>
</compile_context>

<pallas_src>
import functools

import jax
import jax.numpy as jnp
from jax import lax
from jax.experimental import pallas as pl
from jax.experimental.pallas import tpu as pltpu


# ------------------------------------------------------------------ kernels --

def _attn_layer_kernel(q_ref, k_ref, v_ref, keep_ref, w_ref, b_ref,
                       g_ref, be_ref, o_ref, *, heads, causal):
    """One batch element, all heads. Fuses attention + fc_out + residual + LN."""
    q = q_ref[...]                       # (Lq, E)
    k = k_ref[...]                       # (Lk, E)
    v = v_ref[...]                       # (Lk, E)
    w = w_ref[...]                       # (E, E), stored (in, out): no transpose
    Lq, E = q.shape
    Lk = k.shape[0]
    D = E // heads
    inv_scale = jnp.float32(1.0 / (float(D) ** 0.5))   # spec: energy / head_dim**0.5

    # Build the mask in-kernel from the compact (1, Lk) key-keep row.
    mask = jnp.broadcast_to(keep_ref[...] != 0.0, (Lq, Lk))
    if causal:
        row = lax.broadcasted_iota(jnp.int32, (Lq, Lk), 0)
        col = lax.broadcasted_iota(jnp.int32, (Lq, Lk), 1)
        mask = jnp.logical_and(mask, row >= col)

    y = jnp.zeros((Lq, E), jnp.float32)
    for h in range(heads):               # static unroll over heads
        lo, hi = h * D, (h + 1) * D
        qh, kh, vh = q[:, lo:hi], k[:, lo:hi], v[:, lo:hi]
        # energy = qh @ kh^T via dot_general (contract last dims, no XLU transpose)
        energy = lax.dot_general(qh, kh, (((1,), (1,)), ((), ())),
                                 preferred_element_type=jnp.float32)   # (Lq, Lk)
        energy = jnp.where(mask, energy, jnp.float32(-1e20))           # masked_fill
        energy = energy * inv_scale
        energy = energy - jnp.max(energy, axis=-1, keepdims=True)
        p = jnp.exp(energy)
        attn = p * pl.reciprocal(jnp.sum(p, axis=-1, keepdims=True), approx=True)
        out_h = jnp.dot(attn, vh, preferred_element_type=jnp.float32)  # (Lq, D)
        # fc_out folded per head-slab: concat(heads) @ W == sum_h out_h @ W[hD:(h+1)D]
        y = y + jnp.dot(out_h, w[lo:hi, :], preferred_element_type=jnp.float32)
    y = y + b_ref[...]

    # residual (query) + LayerNorm (eps=1e-5, biased variance, affine)
    x = y + q
    mean = jnp.mean(x, axis=-1, keepdims=True)
    var = jnp.mean((x - mean) ** 2, axis=-1, keepdims=True)
    o_ref[...] = (x - mean) * lax.rsqrt(var + jnp.float32(1e-5)) * g_ref[...] + be_ref[...]


def _ffn_ln_kernel(x_ref, w1_ref, b1_ref, w2_ref, b2_ref, g_ref, be_ref, o_ref):
    """Row tile: relu(x @ W1 + b1) @ W2 + b2, then residual + LayerNorm."""
    x = x_ref[...]                                                     # (tr, E)
    h = jnp.dot(x, w1_ref[...], preferred_element_type=jnp.float32) + b1_ref[...]
    h = jnp.maximum(h, 0.0)
    y = jnp.dot(h, w2_ref[...], preferred_element_type=jnp.float32) + b2_ref[...]
    z = y + x
    mean = jnp.mean(z, axis=-1, keepdims=True)
    var = jnp.mean((z - mean) ** 2, axis=-1, keepdims=True)
    o_ref[...] = (z - mean) * lax.rsqrt(var + jnp.float32(1e-5)) * g_ref[...] + be_ref[...]


def _linear_kernel(x_ref, w_ref, b_ref, o_ref):
    # y = x @ W + b  (W stored (in, out))
    o_ref[...] = (jnp.dot(x_ref[...], w_ref[...],
                          preferred_element_type=jnp.float32) + b_ref[...])


# ----------------------------------------------------------------- wrappers --

def _pick_row_tile(rows, target=256):
    """Row tile: multiple of 8 that divides rows, prefers >=2 tiles (v7x 2 TCs)."""
    if rows % 8 != 0:
        return rows                       # must equal the full dim if not 8-aligned
    tile = min(rows, target)
    while rows % tile != 0 or tile % 8 != 0:
        tile -= 8
    if tile == rows and rows >= 16 and (rows // 2) % 8 == 0:
        tile = rows // 2                  # ensure at least two parallel grid steps
    return tile


def attention_layer(values, keys, query, keep, fc_wt, fc_b, gamma, beta, *,
                    heads, causal):
    """Fused MHA + fc_out + residual(query) + LayerNorm. keep: (N, 1, Lk) float."""
    N, Lq, E = query.shape
    Lk = keys.shape[1]
    kern = functools.partial(_attn_layer_kernel, heads=heads, causal=causal)
    return pl.pallas_call(
        kern,
        out_shape=jax.ShapeDtypeStruct((N, Lq, E), jnp.float32),
        grid=(N,),
        in_specs=[
            pl.BlockSpec((None, Lq, E), lambda n: (n, 0, 0)),   # q
            pl.BlockSpec((None, Lk, E), lambda n: (n, 0, 0)),   # k
            pl.BlockSpec((None, Lk, E), lambda n: (n, 0, 0)),   # v
            pl.BlockSpec((None, 1, Lk), lambda n: (n, 0, 0)),   # key-keep row
            pl.BlockSpec((E, E), lambda n: (0, 0)),             # fc_out W (in,out)
            pl.BlockSpec((1, E), lambda n: (0, 0)),             # fc_out b
            pl.BlockSpec((1, E), lambda n: (0, 0)),             # ln gamma
            pl.BlockSpec((1, E), lambda n: (0, 0)),             # ln beta
        ],
        out_specs=pl.BlockSpec((None, Lq, E), lambda n: (n, 0, 0)),
        compiler_params=pltpu.CompilerParams(dimension_semantics=("parallel",)),
    )(query, keys, values, keep, fc_wt, fc_b.reshape(1, E),
      gamma.reshape(1, E), beta.reshape(1, E))


def ffn_layer(x, w1t, b1, w2t, b2, gamma, beta):
    """Fused FFN + residual + LayerNorm, row-tiled with a parallel grid axis."""
    N, L, E = x.shape
    H = w1t.shape[1]
    R = N * L
    tr = _pick_row_tile(R)
    out = pl.pallas_call(
        _ffn_ln_kernel,
        out_shape=jax.ShapeDtypeStruct((R, E), jnp.float32),
        grid=(R // tr,),
        in_specs=[
            pl.BlockSpec((tr, E), lambda i: (i, 0)),
            pl.BlockSpec((E, H), lambda i: (0, 0)),
            pl.BlockSpec((1, H), lambda i: (0, 0)),
            pl.BlockSpec((H, E), lambda i: (0, 0)),
            pl.BlockSpec((1, E), lambda i: (0, 0)),
            pl.BlockSpec((1, E), lambda i: (0, 0)),
            pl.BlockSpec((1, E), lambda i: (0, 0)),
        ],
        out_specs=pl.BlockSpec((tr, E), lambda i: (i, 0)),
        compiler_params=pltpu.CompilerParams(dimension_semantics=("parallel",)),
    )(x.reshape(R, E), w1t, b1.reshape(1, H), w2t, b2.reshape(1, E),
      gamma.reshape(1, E), beta.reshape(1, E))
    return out.reshape(N, L, E)


def linear_out(x, wt, b):
    """Final vocab projection, row-tiled with a parallel grid axis."""
    N, L, E = x.shape
    V = wt.shape[1]
    R = N * L
    tr = _pick_row_tile(R)
    out = pl.pallas_call(
        _linear_kernel,
        out_shape=jax.ShapeDtypeStruct((R, V), jnp.float32),
        grid=(R // tr,),
        in_specs=[pl.BlockSpec((tr, E), lambda i: (i, 0)),
                  pl.BlockSpec((E, V), lambda i: (0, 0)),
                  pl.BlockSpec((1, V), lambda i: (0, 0))],
        out_specs=pl.BlockSpec((tr, V), lambda i: (i, 0)),
        compiler_params=pltpu.CompilerParams(dimension_semantics=("parallel",)),
    )(x.reshape(R, E), wt, b.reshape(1, V))
    return out.reshape(N, L, V)


# ------------------------------------------------------------------- params --

def init_params(key, src_vocab, trg_vocab, E, n_layers, heads, fexp, max_len):
    ks = iter(jax.random.split(key, 256))

    def dense_t(i, o, scale=0.05):  # weights stored pre-transposed: (in, out)
        kw, kb = jax.random.split(next(ks))
        return (scale * jax.random.normal(kw, (i, o), jnp.float32),
                scale * jax.random.normal(kb, (o,), jnp.float32))

    def ln():
        return (jnp.ones((E,), jnp.float32), jnp.zeros((E,), jnp.float32))

    H = fexp * E
    p = {}
    p["enc_word_emb"] = 0.05 * jax.random.normal(next(ks), (src_vocab, E), jnp.float32)
    p["enc_pos_emb"] = 0.05 * jax.random.normal(next(ks), (max_len, E), jnp.float32)
    p["dec_word_emb"] = 0.05 * jax.random.normal(next(ks), (trg_vocab, E), jnp.float32)
    p["dec_pos_emb"] = 0.05 * jax.random.normal(next(ks), (max_len, E), jnp.float32)

    p["enc_layers"] = [dict(attn_fc=dense_t(E, E), ln1=ln(),
                            ff1=dense_t(E, H), ff2=dense_t(H, E), ln2=ln())
                       for _ in range(n_layers)]
    p["dec_layers"] = [dict(sa_fc=dense_t(E, E), ln1=ln(),
                            ca_fc=dense_t(E, E), ln2=ln(),
                            ff1=dense_t(E, H), ff2=dense_t(H, E), ln3=ln())
                       for _ in range(n_layers)]
    p["dec_fc_out"] = dense_t(E, trg_vocab)
    return p


# ------------------------------------------------------------------ forward --

def transformer_forward(params, src, trg, src_pad_idx, heads):
    N, Ls = src.shape
    _, Lt = trg.shape

    # Compact key-keep rows (no (N, Lq, Lk) broadcast masks materialized).
    src_keep = (src != src_pad_idx).astype(jnp.float32).reshape(N, 1, Ls)
    trg_keep = jnp.ones((N, 1, Lt), jnp.float32)   # trg mask is causal-only

    # ---- encoder ----  (dropout = identity in eval mode; embedding gather in XLA)
    x = params["enc_word_emb"][src] + params["enc_pos_emb"][jnp.arange(Ls)][None]
    for lp in params["enc_layers"]:
        x = attention_layer(x, x, x, src_keep, *lp["attn_fc"], *lp["ln1"],
                            heads=heads, causal=False)
        x = ffn_layer(x, *lp["ff1"], *lp["ff2"], *lp["ln2"])
    enc_out = x

    # ---- decoder ----
    y = params["dec_word_emb"][trg] + params["dec_pos_emb"][jnp.arange(Lt)][None]
    for lp in params["dec_layers"]:
        y = attention_layer(y, y, y, trg_keep, *lp["sa_fc"], *lp["ln1"],
                            heads=heads, causal=True)
        y = attention_layer(enc_out, enc_out, y, src_keep, *lp["ca_fc"], *lp["ln2"],
                            heads=heads, causal=False)
        y = ffn_layer(y, *lp["ff1"], *lp["ff2"], *lp["ln3"])

    return linear_out(y, *params["dec_fc_out"])


# --------------------------------------------------------------------- main --

if __name__ == "__main__":
    SRC_VOCAB, TRG_VOCAB = 50, 60
    SRC_PAD_IDX = 0
    EMBED, LAYERS, HEADS, FEXP, MAX_LEN = 32, 2, 4, 2, 16
    N, LS, LT = 2, 8, 8

    key = jax.random.PRNGKey(0)
    kp, ks_, kt = jax.random.split(key, 3)
    params = init_params(kp, SRC_VOCAB, TRG_VOCAB, EMBED, LAYERS, HEADS, FEXP, MAX_LEN)

    src = jax.random.randint(ks_, (N, LS), 0, SRC_VOCAB, dtype=jnp.int32)
    trg = jax.random.randint(kt, (N, LT), 0, TRG_VOCAB, dtype=jnp.int32)

    fwd = jax.jit(functools.partial(transformer_forward,
                                    src_pad_idx=SRC_PAD_IDX, heads=HEADS))
    out = fwd(params, src, trg)
    out = jax.block_until_ready(out)
    assert out.shape == (N, LT, TRG_VOCAB)
    assert bool(jnp.all(jnp.isfinite(out)))
    print("KERNEL_OK")
</pallas_src>

<mosaic_0001>
module attributes {stable_mosaic.version = 11 : i64} {
  func.func @_ffn_ln_kernel(%arg0: i32, %arg1: memref<8x32xf32, #tpu.memory_space<vmem>>, %arg2: memref<32x64xf32, #tpu.memory_space<vmem>>, %arg3: memref<1x64xf32, #tpu.memory_space<vmem>>, %arg4: memref<64x32xf32, #tpu.memory_space<vmem>>, %arg5: memref<1x32xf32, #tpu.memory_space<vmem>>, %arg6: memref<1x32xf32, #tpu.memory_space<vmem>>, %arg7: memref<1x32xf32, #tpu.memory_space<vmem>>, %arg8: memref<8x32xf32, #tpu.memory_space<vmem>>) attributes {dimension_semantics = [#tpu.dimension_semantics<parallel>], iteration_bounds = array<i64: 2>, scalar_prefetch = 0 : i64, scratch_operands = 0 : i64, tpu.core_type = #tpu.core_type<tc>, window_params = [{transform_indices = @transform_0, window_bounds = array<i64: 8, 32>}, {pipeline_mode = #tpu.pipeline_mode<synchronous>, transform_indices = @transform_1, window_bounds = array<i64: 32, 64>}, {pipeline_mode = #tpu.pipeline_mode<synchronous>, transform_indices = @transform_2, window_bounds = array<i64: 1, 64>}, {pipeline_mode = #tpu.pipeline_mode<synchronous>, transform_indices = @transform_3, window_bounds = array<i64: 64, 32>}, {pipeline_mode = #tpu.pipeline_mode<synchronous>, transform_indices = @transform_4, window_bounds = array<i64: 1, 32>}, {pipeline_mode = #tpu.pipeline_mode<synchronous>, transform_indices = @transform_5, window_bounds = array<i64: 1, 32>}, {pipeline_mode = #tpu.pipeline_mode<synchronous>, transform_indices = @transform_6, window_bounds = array<i64: 1, 32>}, {transform_indices = @transform_7, window_bounds = array<i64: 8, 32>}]} {
    %c0 = arith.constant 0 : index
    %c0_0 = arith.constant 0 : index
    %0 = vector.load %arg1[%c0, %c0_0] : memref<8x32xf32, #tpu.memory_space<vmem>>, vector<8x32xf32>
    %c0_1 = arith.constant 0 : index
    %c0_2 = arith.constant 0 : index
    %1 = vector.load %arg2[%c0_1, %c0_2] : memref<32x64xf32, #tpu.memory_space<vmem>>, vector<32x64xf32>
    %cst = arith.constant dense<0.000000e+00> : vector<8x64xf32>
    %2 = tpu.matmul %0, %1, %cst {dimension_numbers = #tpu.dot_dimension_numbers<[1], [0], [0], [1], [0, 0, 1, 1], [], []>} : vector<8x32xf32>, vector<32x64xf32>, vector<8x64xf32> -> vector<8x64xf32>
    %c0_3 = arith.constant 0 : index
    %c0_4 = arith.constant 0 : index
    %3 = vector.load %arg3[%c0_3, %c0_4] : memref<1x64xf32, #tpu.memory_space<vmem>>, vector<1x64xf32>
    %4 = vector.broadcast %3 : vector<1x64xf32> to vector<8x64xf32>
    %5 = arith.addf %2, %4 : vector<8x64xf32>
    %cst_5 = arith.constant 0.000000e+00 : f32
    %6 = vector.broadcast %cst_5 : f32 to vector<8x64xf32>
    %7 = arith.maximumf %5, %6 : vector<8x64xf32>
    %c0_6 = arith.constant 0 : index
    %c0_7 = arith.constant 0 : index
    %8 = vector.load %arg4[%c0_6, %c0_7] : memref<64x32xf32, #tpu.memory_space<vmem>>, vector<64x32xf32>
    %cst_8 = arith.constant dense<0.000000e+00> : vector<8x32xf32>
    %9 = tpu.matmul %7, %8, %cst_8 {dimension_numbers = #tpu.dot_dimension_numbers<[1], [0], [0], [1], [0, 0, 1, 1], [], []>} : vector<8x64xf32>, vector<64x32xf32>, vector<8x32xf32> -> vector<8x32xf32>
    %c0_9 = arith.constant 0 : index
    %c0_10 = arith.constant 0 : index
    %10 = vector.load %arg5[%c0_9, %c0_10] : memref<1x32xf32, #tpu.memory_space<vmem>>, vector<1x32xf32>
    %11 = vector.broadcast %10 : vector<1x32xf32> to vector<8x32xf32>
    %12 = arith.addf %9, %11 : vector<8x32xf32>
    %13 = arith.addf %12, %0 : vector<8x32xf32>
    %cst_11 = arith.constant dense<0.000000e+00> : vector<8xf32>
    %14 = vector.multi_reduction <add>, %13, %cst_11 [1] : vector<8x32xf32> to vector<8xf32>
    %15 = vector.shape_cast %14 : vector<8xf32> to vector<8x1xf32>
    %cst_12 = arith.constant 3.200000e+01 : f32
    %16 = vector.broadcast %cst_12 : f32 to vector<8x1xf32>
    %17 = arith.divf %15, %16 : vector<8x1xf32>
    %18 = vector.broadcast %17 : vector<8x1xf32> to vector<8x32xf32>
    %19 = arith.subf %13, %18 : vector<8x32xf32>
    %20 = arith.mulf %19, %19 : vector<8x32xf32>
    %cst_13 = arith.constant dense<0.000000e+00> : vector<8xf32>
    %21 = vector.multi_reduction <add>, %20, %cst_13 [1] : vector<8x32xf32> to vector<8xf32>
    %22 = vector.shape_cast %21 : vector<8xf32> to vector<8x1xf32>
    %cst_14 = arith.constant 3.200000e+01 : f32
    %23 = vector.broadcast %cst_14 : f32 to vector<8x1xf32>
    %24 = arith.divf %22, %23 : vector<8x1xf32>
    %25 = vector.broadcast %17 : vector<8x1xf32> to vector<8x32xf32>
    %26 = arith.subf %13, %25 : vector<8x32xf32>
    %cst_15 = arith.constant 9.99999974E-6 : f32
    %27 = vector.broadcast %cst_15 : f32 to vector<8x1xf32>
    %28 = arith.addf %24, %27 : vector<8x1xf32>
    %29 = math.rsqrt %28 : vector<8x1xf32>
    %30 = vector.broadcast %29 : vector<8x1xf32> to vector<8x32xf32>
    %31 = arith.mulf %26, %30 : vector<8x32xf32>
    %c0_16 = arith.constant 0 : index
    %c0_17 = arith.constant 0 : index
    %32 = vector.load %arg6[%c0_16, %c0_17] : memref<1x32xf32, #tpu.memory_space<vmem>>, vector<1x32xf32>
    %33 = vector.broadcast %32 : vector<1x32xf32> to vector<8x32xf32>
    %34 = arith.mulf %31, %33 : vector<8x32xf32>
    %c0_18 = arith.constant 0 : index
    %c0_19 = arith.constant 0 : index
    %35 = vector.load %arg7[%c0_18, %c0_19] : memref<1x32xf32, #tpu.memory_space<vmem>>, vector<1x32xf32>
    %36 = vector.broadcast %35 : vector<1x32xf32> to vector<8x32xf32>
    %37 = arith.addf %34, %36 : vector<8x32xf32>
    %c0_20 = arith.constant 0 : index
    %c0_21 = arith.constant 0 : index
    %38 = vector.load %arg8[%c0_20, %c0_21] : memref<8x32xf32, #tpu.memory_space<vmem>>, vector<8x32xf32>
    tpu.vector_store %arg8[%c0_20, %c0_21], %37 {strides = array<i32>} : memref<8x32xf32, #tpu.memory_space<vmem>>, vector<8x32xf32>,
    return
  }
  func.func @transform_0(%arg0: i32) -> (i32, i32) {
    %c0_i32 = arith.constant 0 : i32
    %c0_i32_0 = arith.constant 0 : i32
    return %arg0, %c0_i32 : i32, i32
  }
  func.func @transform_1(%arg0: i32) -> (i32, i32) {
    %c0_i32 = arith.constant 0 : i32
    %c0_i32_0 = arith.constant 0 : i32
    %c0_i32_1 = arith.constant 0 : i32
    return %c0_i32, %c0_i32_0 : i32, i32
  }
  func.func @transform_2(%arg0: i32) -> (i32, i32) {
    %c0_i32 = arith.constant 0 : i32
    %c0_i32_0 = arith.constant 0 : i32
    %c0_i32_1 = arith.constant 0 : i32
    return %c0_i32, %c0_i32_0 : i32, i32
  }
  func.func @transform_3(%arg0: i32) -> (i32, i32) {
    %c0_i32 = arith.constant 0 : i32
    %c0_i32_0 = arith.constant 0 : i32
    %c0_i32_1 = arith.constant 0 : i32
    return %c0_i32, %c0_i32_0 : i32, i32
  }
  func.func @transform_4(%arg0: i32) -> (i32, i32) {
    %c0_i32 = arith.constant 0 : i32
    %c0_i32_0 = arith.constant 0 : i32
    %c0_i32_1 = arith.constant 0 : i32
    return %c0_i32, %c0_i32_0 : i32, i32
  }
  func.func @transform_5(%arg0: i32) -> (i32, i32) {
    %c0_i32 = arith.constant 0 : i32
    %c0_i32_0 = arith.constant 0 : i32
    %c0_i32_1 = arith.constant 0 : i32
    return %c0_i32, %c0_i32_0 : i32, i32
  }
  func.func @transform_6(%arg0: i32) -> (i32, i32) {
    %c0_i32 = arith.constant 0 : i32
    %c0_i32_0 = arith.constant 0 : i32
    %c0_i32_1 = arith.constant 0 : i32
    return %c0_i32, %c0_i32_0 : i32, i32
  }
  func.func @transform_7(%arg0: i32) -> (i32, i32) {
    %c0_i32 = arith.constant 0 : i32
    %c0_i32_0 = arith.constant 0 : i32
    return %arg0, %c0_i32 : i32, i32
  }
}

module attributes {stable_mosaic.version = 11 : i64} {
  func.func @_attn_layer_kernel(%arg0: i32, %arg1: memref<1x8x32xf32, #tpu.memory_space<vmem>>, %arg2: memref<1x8x32xf32, #tpu.memory_space<vmem>>, %arg3: memref<1x8x32xf32, #tpu.memory_space<vmem>>, %arg4: memref<1x1x8xf32, #tpu.memory_space<vmem>>, %arg5: memref<32x32xf32, #tpu.memory_space<vmem>>, %arg6: memref<1x32xf32, #tpu.memory_space<vmem>>, %arg7: memref<1x32xf32, #tpu.memory_space<vmem>>, %arg8: memref<1x32xf32, #tpu.memory_space<vmem>>, %arg9: memref<1x8x32xf32, #tpu.memory_space<vmem>>) attributes {dimension_semantics = [#tpu.dimension_semantics<parallel>], iteration_bounds = array<i64: 2>, scalar_prefetch = 0 : i64, scratch_operands = 0 : i64, tpu.core_type = #tpu.core_type<tc>, window_params = [{transform_indices = @transform_0, window_bounds = array<i64: 1, 8, 32>}, {transform_indices = @transform_1, window_bounds = array<i64: 1, 8, 32>}, {transform_indices = @transform_2, window_bounds = array<i64: 1, 8, 32>}, {transform_indices = @transform_3, window_bounds = array<i64: 1, 1, 8>}, {pipeline_mode = #tpu.pipeline_mode<synchronous>, transform_indices = @transform_4, window_bounds = array<i64: 32, 32>}, {pipeline_mode = #tpu.pipeline_mode<synchronous>, transform_indices = @transform_5, window_bounds = array<i64: 1, 32>}, {pipeline_mode = #tpu.pipeline_mode<synchronous>, transform_indices = @transform_6, window_bounds = array<i64: 1, 32>}, {pipeline_mode = #tpu.pipeline_mode<synchronous>, transform_indices = @transform_7, window_bounds = array<i64: 1, 32>}, {transform_indices = @transform_8, window_bounds = array<i64: 1, 8, 32>}]} {
    %c0 = arith.constant 0 : index
    %c0_0 = arith.constant 0 : index
    %c0_1 = arith.constant 0 : index
    %0 = vector.load %arg1[%c0, %c0_0, %c0_1] : memref<1x8x32xf32, #tpu.memory_space<vmem>>, vector<1x8x32xf32>
    %1 = vector.shape_cast %0 : vector<1x8x32xf32> to vector<8x32xf32>
    %c0_2 = arith.constant 0 : index
    %c0_3 = arith.constant 0 : index
    %c0_4 = arith.constant 0 : index
    %2 = vector.load %arg2[%c0_2, %c0_3, %c0_4] : memref<1x8x32xf32, #tpu.memory_space<vmem>>, vector<1x8x32xf32>
    %3 = vector.shape_cast %2 : vector<1x8x32xf32> to vector<8x32xf32>
    %c0_5 = arith.constant 0 : index
    %c0_6 = arith.constant 0 : index
    %c0_7 = arith.constant 0 : index
    %4 = vector.load %arg3[%c0_5, %c0_6, %c0_7] : memref<1x8x32xf32, #tpu.memory_space<vmem>>, vector<1x8x32xf32>
    %5 = vector.shape_cast %4 : vector<1x8x32xf32> to vector<8x32xf32>
    %c0_8 = arith.constant 0 : index
    %c0_9 = arith.constant 0 : index
    %6 = vector.load %arg5[%c0_8, %c0_9] : memref<32x32xf32, #tpu.memory_space<vmem>>, vector<32x32xf32>
    %c0_10 = arith.constant 0 : index
    %c0_11 = arith.constant 0 : index
    %c0_12 = arith.constant 0 : index
    %7 = vector.load %arg4[%c0_10, %c0_11, %c0_12] : memref<1x1x8xf32, #tpu.memory_space<vmem>>, vector<1x1x8xf32>
    %8 = vector.shape_cast %7 : vector<1x1x8xf32> to vector<1x8xf32>
    %cst = arith.constant 0.000000e+00 : f32
    %9 = vector.broadcast %cst : f32 to vector<1x8xf32>
    %10 = arith.cmpf one, %8, %9 : vector<1x8xf32>
    %11 = vector.shape_cast %10 : vector<1x8xi1> to vector<1x8xi1>
    %12 = vector.broadcast %11 : vector<1x8xi1> to vector<8x8xi1>
    %cst_13 = arith.constant 0.000000e+00 : f32
    %13 = vector.broadcast %cst_13 : f32 to vector<8x32xf32>
    %14 = vector.extract_strided_slice %1 {offsets = [0, 0], sizes = [8, 8], strides = [1, 1]} : vector<8x32xf32> to vector<8x8xf32>
    %15 = vector.extract_strided_slice %3 {offsets = [0, 0], sizes = [8, 8], strides = [1, 1]} : vector<8x32xf32> to vector<8x8xf32>
    %16 = vector.extract_strided_slice %5 {offsets = [0, 0], sizes = [8, 8], strides = [1, 1]} : vector<8x32xf32> to vector<8x8xf32>
    %cst_14 = arith.constant dense<0.000000e+00> : vector<8x8xf32>
    %17 = tpu.matmul %14, %15, %cst_14 {dimension_numbers = #tpu.dot_dimension_numbers<[1], [1], [0], [0], [0, 0, 1, 0], [], []>} : vector<8x8xf32>, vector<8x8xf32>, vector<8x8xf32> -> vector<8x8xf32>
    %cst_15 = arith.constant -1.000000e+20 : f32
    %18 = vector.broadcast %cst_15 : f32 to vector<8x8xf32>
    %19 = arith.select %12, %17, %18 : vector<8x8xi1>, vector<8x8xf32>
    %cst_16 = arith.constant 0.353553385 : f32
    %20 = vector.broadcast %cst_16 : f32 to vector<8x8xf32>
    %21 = arith.mulf %19, %20 : vector<8x8xf32>
    %cst_17 = arith.constant dense<0xFF800000> : vector<8xf32>
    %22 = vector.multi_reduction <maximumf>, %21, %cst_17 [1] : vector<8x8xf32> to vector<8xf32>
    %23 = vector.shape_cast %22 : vector<8xf32> to vector<8x1xf32>
    %24 = vector.broadcast %23 : vector<8x1xf32> to vector<8x8xf32>
    %25 = arith.subf %21, %24 : vector<8x8xf32>
    %26 = math.exp %25 : vector<8x8xf32>
    %cst_18 = arith.constant dense<0.000000e+00> : vector<8xf32>
    %27 = vector.multi_reduction <add>, %26, %cst_18 [1] : vector<8x8xf32> to vector<8xf32>
    %28 = vector.shape_cast %27 : vector<8xf32> to vector<8x1xf32>
    %29 = tpu.reciprocal %28 {approx = true} : vector<8x1xf32> -> vector<8x1xf32>
    %30 = vector.broadcast %29 : vector<8x1xf32> to vector<8x8xf32>
    %31 = arith.mulf %26, %30 : vector<8x8xf32>
    %cst_19 = arith.constant dense<0.000000e+00> : vector<8x8xf32>
    %32 = tpu.matmul %31, %16, %cst_19 {dimension_numbers = #tpu.dot_dimension_numbers<[1], [0], [0], [1], [0, 0, 1, 1], [], []>} : vector<8x8xf32>, vector<8x8xf32>, vector<8x8xf32> -> vector<8x8xf32>
    %33 = vector.extract_strided_slice %6 {offsets = [0, 0], sizes = [8, 32], strides = [1, 1]} : vector<32x32xf32> to vector<8x32xf32>
    %cst_20 = arith.constant dense<0.000000e+00> : vector<8x32xf32>
    %34 = tpu.matmul %32, %33, %cst_20 {dimension_numbers = #tpu.dot_dimension_numbers<[1], [0], [0], [1], [0, 0, 1, 1], [], []>} : vector<8x8xf32>, vector<8x32xf32>, vector<8x32xf32> -> vector<8x32xf32>
    %35 = arith.addf %13, %34 : vector<8x32xf32>
    %36 = vector.extract_strided_slice %1 {offsets = [0, 8], sizes = [8, 8], strides = [1, 1]} : vector<8x32xf32> to vector<8x8xf32>
    %37 = vector.extract_strided_slice %3 {offsets = [0, 8], sizes = [8, 8], strides = [1, 1]} : vector<8x32xf32> to vector<8x8xf32>
    %38 = vector.extract_strided_slice %5 {offsets = [0, 8], sizes = [8, 8], strides = [1, 1]} : vector<8x32xf32> to vector<8x8xf32>
    %cst_21 = arith.constant dense<0.000000e+00> : vector<8x8xf32>
    %39 = tpu.matmul %36, %37, %cst_21 {dimension_numbers = #tpu.dot_dimension_numbers<[1], [1], [0], [0], [0, 0, 1, 0], [], []>} : vector<8x8xf32>, vector<8x8xf32>, vector<8x8xf32> -> vector<8x8xf32>
    %cst_22 = arith.constant -1.000000e+20 : f32
    %40 = vector.broadcast %cst_22 : f32 to vector<8x8xf32>
    %41 = arith.select %12, %39, %40 : vector<8x8xi1>, vector<8x8xf32>
    %cst_23 = arith.constant 0.353553385 : f32
    %42 = vector.broadcast %cst_23 : f32 to vector<8x8xf32>
    %43 = arith.mulf %41, %42 : vector<8x8xf32>
    %cst_24 = arith.constant dense<0xFF800000> : vector<8xf32>
    %44 = vector.multi_reduction <maximumf>, %43, %cst_24 [1] : vector<8x8xf32> to vector<8xf32>
    %45 = vector.shape_cast %44 : vector<8xf32> to vector<8x1xf32>
    %46 = vector.broadcast %45 : vector<8x1xf32> to vector<8x8xf32>
    %47 = arith.subf %43, %46 : vector<8x8xf32>
    %48 = math.exp %47 : vector<8x8xf32>
    %cst_25 = arith.constant dense<0.000000e+00> : vector<8xf32>
    %49 = vector.multi_reduction <add>, %48, %cst_25 [1] : vector<8x8xf32> to vector<8xf32>
    %50 = vector.shape_cast %49 : vector<8xf32> to vector<8x1xf32>
    %51 = tpu.reciprocal %50 {approx = true} : vector<8x1xf32> -> vector<8x1xf32>
    %52 = vector.broadcast %51 : vector<8x1xf32> to vector<8x8xf32>
    %53 = arith.mulf %48, %52 : vector<8x8xf32>
    %cst_26 = arith.constant dense<0.000000e+00> : vector<8x8xf32>
    %54 = tpu.matmul %53, %38, %cst_26 {dimension_numbers = #tpu.dot_dimension_numbers<[1], [0], [0], [1], [0, 0, 1, 1], [], []>} : vector<8x8xf32>, vector<8x8xf32>, vector<8x8xf32> -> vector<8x8xf32>
    %55 = vector.extract_strided_slice %6 {offsets = [8, 0], sizes = [8, 32], strides = [1, 1]} : vector<32x32xf32> to vector<8x32xf32>
    %cst_27 = arith.constant dense<0.000000e+00> : vector<8x32xf32>
    %56 = tpu.matmul %54, %55, %cst_27 {dimension_numbers = #tpu.dot_dimension_numbers<[1], [0], [0], [1], [0, 0, 1, 1], [], []>} : vector<8x8xf32>, vector<8x32xf32>, vector<8x32xf32> -> vector<8x32xf32>
    %57 = arith.addf %35, %56 : vector<8x32xf32>
    %58 = vector.extract_strided_slice %1 {offsets = [0, 16], sizes = [8, 8], strides = [1, 1]} : vector<8x32xf32> to vector<8x8xf32>
    %59 = vector.extract_strided_slice %3 {offsets = [0, 16], sizes = [8, 8], strides = [1, 1]} : vector<8x32xf32> to vector<8x8xf32>
    %60 = vector.extract_strided_slice %5 {offsets = [0, 16], sizes = [8, 8], strides = [1, 1]} : vector<8x32xf32> to vector<8x8xf32>
    %cst_28 = arith.constant dense<0.000000e+00> : vector<8x8xf32>
    %61 = tpu.matmul %58, %59, %cst_28 {dimension_numbers = #tpu.dot_dimension_numbers<[1], [1], [0], [0], [0, 0, 1, 0], [], []>} : vector<8x8xf32>, vector<8x8xf32>, vector<8x8xf32> -> vector<8x8xf32>
    %cst_29 = arith.constant -1.000000e+20 : f32
    %62 = vector.broadcast %cst_29 : f32 to vector<8x8xf32>
    %63 = arith.select %12, %61, %62 : vector<8x8xi1>, vector<8x8xf32>
    %cst_30 = arith.constant 0.353553385 : f32
    %64 = vector.broadcast %cst_30 : f32 to vector<8x8xf32>
    %65 = arith.mulf %63, %64 : vector<8x8xf32>
    %cst_31 = arith.constant dense<0xFF800000> : vector<8xf32>
    %66 = vector.multi_reduction <maximumf>, %65, %cst_31 [1] : vector<8x8xf32> to vector<8xf32>
    %67 = vector.shape_cast %66 : vector<8xf32> to vector<8x1xf32>
    %68 = vector.broadcast %67 : vector<8x1xf32> to vector<8x8xf32>
    %69 = arith.subf %65, %68 : vector<8x8xf32>
    %70 = math.exp %69 : vector<8x8xf32>
    %cst_32 = arith.constant dense<0.000000e+00> : vector<8xf32>
    %71 = vector.multi_reduction <add>, %70, %cst_32 [1] : vector<8x8xf32> to vector<8xf32>
    %72 = vector.shape_cast %71 : vector<8xf32> to vector<8x1xf32>
    %73 = tpu.reciprocal %72 {approx = true} : vector<8x1xf32> -> vector<8x1xf32>
    %74 = vector.broadcast %73 : vector<8x1xf32> to vector<8x8xf32>
    %75 = arith.mulf %70, %74 : vector<8x8xf32>
    %cst_33 = arith.constant dense<0.000000e+00> : vector<8x8xf32>
    %76 = tpu.matmul %75, %60, %cst_33 {dimension_numbers = #tpu.dot_dimension_numbers<[1], [0], [0], [1], [0, 0, 1, 1], [], []>} : vector<8x8xf32>, vector<8x8xf32>, vector<8x8xf32> -> vector<8x8xf32>
    %77 = vector.extract_strided_slice %6 {offsets = [16, 0], sizes = [8, 32], strides = [1, 1]} : vector<32x32xf32> to vector<8x32xf32>
    %cst_34 = arith.constant dense<0.000000e+00> : vector<8x32xf32>
    %78 = tpu.matmul %76, %77, %cst_34 {dimension_numbers = #tpu.dot_dimension_numbers<[1], [0], [0], [1], [0, 0, 1, 1], [], []>} : vector<8x8xf32>, vector<8x32xf32>, vector<8x32xf32> -> vector<8x32xf32>
    %79 = arith.addf %57, %78 : vector<8x32xf32>
    %80 = vector.extract_strided_slice %1 {offsets = [0, 24], sizes = [8, 8], strides = [1, 1]} : vector<8x32xf32> to vector<8x8xf32>
    %81 = vector.extract_strided_slice %3 {offsets = [0, 24], sizes = [8, 8], strides = [1, 1]} : vector<8x32xf32> to vector<8x8xf32>
    %82 = vector.extract_strided_slice %5 {offsets = [0, 24], sizes = [8, 8], strides = [1, 1]} : vector<8x32xf32> to vector<8x8xf32>
    %cst_35 = arith.constant dense<0.000000e+00> : vector<8x8xf32>
    %83 = tpu.matmul %80, %81, %cst_35 {dimension_numbers = #tpu.dot_dimension_numbers<[1], [1], [0], [0], [0, 0, 1, 0], [], []>} : vector<8x8xf32>, vector<8x8xf32>, vector<8x8xf32> -> vector<8x8xf32>
    %cst_36 = arith.constant -1.000000e+20 : f32
    %84 = vector.broadcast %cst_36 : f32 to vector<8x8xf32>
    %85 = arith.select %12, %83, %84 : vector<8x8xi1>, vector<8x8xf32>
    %cst_37 = arith.constant 0.353553385 : f32
    %86 = vector.broadcast %cst_37 : f32 to vector<8x8xf32>
    %87 = arith.mulf %85, %86 : vector<8x8xf32>
    %cst_38 = arith.constant dense<0xFF800000> : vector<8xf32>
    %88 = vector.multi_reduction <maximumf>, %87, %cst_38 [1] : vector<8x8xf32> to vector<8xf32>
    %89 = vector.shape_cast %88 : vector<8xf32> to vector<8x1xf32>
    %90 = vector.broadcast %89 : vector<8x1xf32> to vector<8x8xf32>
    %91 = arith.subf %87, %90 : vector<8x8xf32>
    %92 = math.exp %91 : vector<8x8xf32>
    %cst_39 = arith.constant dense<0.000000e+00> : vector<8xf32>
    %93 = vector.multi_reduction <add>, %92, %cst_39 [1] : vector<8x8xf32> to vector<8xf32>
    %94 = vector.shape_cast %93 : vector<8xf32> to vector<8x1xf32>
    %95 = tpu.reciprocal %94 {approx = true} : vector<8x1xf32> -> vector<8x1xf32>
    %96 = vector.broadcast %95 : vector<8x1xf32> to vector<8x8xf32>
    %97 = arith.mulf %92, %96 : vector<8x8xf32>
    %cst_40 = arith.constant dense<0.000000e+00> : vector<8x8xf32>
    %98 = tpu.matmul %97, %82, %cst_40 {dimension_numbers = #tpu.dot_dimension_numbers<[1], [0], [0], [1], [0, 0, 1, 1], [], []>} : vector<8x8xf32>, vector<8x8xf32>, vector<8x8xf32> -> vector<8x8xf32>
    %99 = vector.extract_strided_slice %6 {offsets = [24, 0], sizes = [8, 32], strides = [1, 1]} : vector<32x32xf32> to vector<8x32xf32>
    %cst_41 = arith.constant dense<0.000000e+00> : vector<8x32xf32>
    %100 = tpu.matmul %98, %99, %cst_41 {dimension_numbers = #tpu.dot_dimension_numbers<[1], [0], [0], [1], [0, 0, 1, 1], [], []>} : vector<8x8xf32>, vector<8x32xf32>, vector<8x32xf32> -> vector<8x32xf32>
    %101 = arith.addf %79, %100 : vector<8x32xf32>
    %c0_42 = arith.constant 0 : index
    %c0_43 = arith.constant 0 : index
    %102 = vector.load %arg6[%c0_42, %c0_43] : memref<1x32xf32, #tpu.memory_space<vmem>>, vector<1x32xf32>
    %103 = vector.broadcast %102 : vector<1x32xf32> to vector<8x32xf32>
    %104 = arith.addf %101, %103 : vector<8x32xf32>
    %105 = arith.addf %104, %1 : vector<8x32xf32>
    %cst_44 = arith.constant dense<0.000000e+00> : vector<8xf32>
    %106 = vector.multi_reduction <add>, %105, %cst_44 [1] : vector<8x32xf32> to vector<8xf32>
    %107 = vector.shape_cast %106 : vector<8xf32> to vector<8x1xf32>
    %cst_45 = arith.constant 3.200000e+01 : f32
    %108 = vector.broadcast %cst_45 : f32 to vector<8x1xf32>
    %109 = arith.divf %107, %108 : vector<8x1xf32>
    %110 = vector.broadcast %109 : vector<8x1xf32> to vector<8x32xf32>
    %111 = arith.subf %105, %110 : vector<8x32xf32>
    %112 = arith.mulf %111, %111 : vector<8x32xf32>
    %cst_46 = arith.constant dense<0.000000e+00> : vector<8xf32>
    %113 = vector.multi_reduction <add>, %112, %cst_46 [1] : vector<8x32xf32> to vector<8xf32>
    %114 = vector.shape_cast %113 : vector<8xf32> to vector<8x1xf32>
    %cst_47 = arith.constant 3.200000e+01 : f32
    %115 = vector.broadcast %cst_47 : f32 to vector<8x1xf32>
    %116 = arith.divf %114, %115 : vector<8x1xf32>
    %117 = vector.broadcast %109 : vector<8x1xf32> to vector<8x32xf32>
    %118 = arith.subf %105, %117 : vector<8x32xf32>
    %cst_48 = arith.constant 9.99999974E-6 : f32
    %119 = vector.broadcast %cst_48 : f32 to vector<8x1xf32>
    %120 = arith.addf %116, %119 : vector<8x1xf32>
    %121 = math.rsqrt %120 : vector<8x1xf32>
    %122 = vector.broadcast %121 : vector<8x1xf32> to vector<8x32xf32>
    %123 = arith.mulf %118, %122 : vector<8x32xf32>
    %c0_49 = arith.constant 0 : index
    %c0_50 = arith.constant 0 : index
    %124 = vector.load %arg7[%c0_49, %c0_50] : memref<1x32xf32, #tpu.memory_space<vmem>>, vector<1x32xf32>
    %125 = vector.broadcast %124 : vector<1x32xf32> to vector<8x32xf32>
    %126 = arith.mulf %123, %125 : vector<8x32xf32>
    %c0_51 = arith.constant 0 : index
    %c0_52 = arith.constant 0 : index
    %127 = vector.load %arg8[%c0_51, %c0_52] : memref<1x32xf32, #tpu.memory_space<vmem>>, vector<1x32xf32>
    %128 = vector.broadcast %127 : vector<1x32xf32> to vector<8x32xf32>
    %129 = arith.addf %126, %128 : vector<8x32xf32>
    %c0_53 = arith.constant 0 : index
    %c0_54 = arith.constant 0 : index
    %c0_55 = arith.constant 0 : index
    %130 = vector.load %arg9[%c0_53, %c0_54, %c0_55] : memref<1x8x32xf32, #tpu.memory_space<vmem>>, vector<1x8x32xf32>
    %131 = vector.shape_cast %130 : vector<1x8x32xf32> to vector<8x32xf32>
    %132 = vector.shape_cast %129 : vector<8x32xf32> to vector<1x8x32xf32>
    tpu.vector_store %arg9[%c0_53, %c0_54, %c0_55], %132 {strides = array<i32>} : memref<1x8x32xf32, #tpu.memory_space<vmem>>, vector<1x8x32xf32>,
    return
  }
  func.func @transform_0(%arg0: i32) -> (i32, i32, i32) {
    %c0_i32 = arith.constant 0 : i32
    %c0_i32_0 = arith.constant 0 : i32
    %c0_i32_1 = arith.constant 0 : i32
    return %arg0, %c0_i32, %c0_i32_0 : i32, i32, i32
  }
  func.func @transform_1(%arg0: i32) -> (i32, i32, i32) {
    %c0_i32 = arith.constant 0 : i32
    %c0_i32_0 = arith.constant 0 : i32
    %c0_i32_1 = arith.constant 0 : i32
    return %arg0, %c0_i32, %c0_i32_0 : i32, i32, i32
  }
  func.func @transform_2(%arg0: i32) -> (i32, i32, i32) {
    %c0_i32 = arith.constant 0 : i32
    %c0_i32_0 = arith.constant 0 : i32
    %c0_i32_1 = arith.constant 0 : i32
    return %arg0, %c0_i32, %c0_i32_0 : i32, i32, i32
  }
  func.func @transform_3(%arg0: i32) -> (i32, i32, i32) {
    %c0_i32 = arith.constant 0 : i32
    %c0_i32_0 = arith.constant 0 : i32
    %c0_i32_1 = arith.constant 0 : i32
    return %arg0, %c0_i32, %c0_i32_0 : i32, i32, i32
  }
  func.func @transform_4(%arg0: i32) -> (i32, i32) {
    %c0_i32 = arith.constant 0 : i32
    %c0_i32_0 = arith.constant 0 : i32
    %c0_i32_1 = arith.constant 0 : i32
    return %c0_i32, %c0_i32_0 : i32, i32
  }
  func.func @transform_5(%arg0: i32) -> (i32, i32) {
    %c0_i32 = arith.constant 0 : i32
    %c0_i32_0 = arith.constant 0 : i32
    %c0_i32_1 = arith.constant 0 : i32
    return %c0_i32, %c0_i32_0 : i32, i32
  }
  func.func @transform_6(%arg0: i32) -> (i32, i32) {
    %c0_i32 = arith.constant 0 : i32
    %c0_i32_0 = arith.constant 0 : i32
    %c0_i32_1 = arith.constant 0 : i32
    return %c0_i32, %c0_i32_0 : i32, i32
  }
  func.func @transform_7(%arg0: i32) -> (i32, i32) {
    %c0_i32 = arith.constant 0 : i32
    %c0_i32_0 = arith.constant 0 : i32
    %c0_i32_1 = arith.constant 0 : i32
    return %c0_i32, %c0_i32_0 : i32, i32
  }
  func.func @transform_8(%arg0: i32) -> (i32, i32, i32) {
    %c0_i32 = arith.constant 0 : i32
    %c0_i32_0 = arith.constant 0 : i32
    %c0_i32_1 = arith.constant 0 : i32
    return %arg0, %c0_i32, %c0_i32_0 : i32, i32, i32
  }
}

module attributes {stable_mosaic.version = 11 : i64} {
  func.func @_linear_kernel(%arg0: i32, %arg1: memref<8x32xf32, #tpu.memory_space<vmem>>, %arg2: memref<32x60xf32, #tpu.memory_space<vmem>>, %arg3: memref<1x60xf32, #tpu.memory_space<vmem>>, %arg4: memref<8x60xf32, #tpu.memory_space<vmem>>) attributes {dimension_semantics = [#tpu.dimension_semantics<parallel>], iteration_bounds = array<i64: 2>, scalar_prefetch = 0 : i64, scratch_operands = 0 : i64, tpu.core_type = #tpu.core_type<tc>, window_params = [{transform_indices = @transform_0, window_bounds = array<i64: 8, 32>}, {pipeline_mode = #tpu.pipeline_mode<synchronous>, transform_indices = @transform_1, window_bounds = array<i64: 32, 60>}, {pipeline_mode = #tpu.pipeline_mode<synchronous>, transform_indices = @transform_2, window_bounds = array<i64: 1, 60>}, {transform_indices = @transform_3, window_bounds = array<i64: 8, 60>}]} {
    %c0 = arith.constant 0 : index
    %c0_0 = arith.constant 0 : index
    %0 = vector.load %arg1[%c0, %c0_0] : memref<8x32xf32, #tpu.memory_space<vmem>>, vector<8x32xf32>
    %c0_1 = arith.constant 0 : index
    %c0_2 = arith.constant 0 : index
    %1 = vector.load %arg2[%c0_1, %c0_2] : memref<32x60xf32, #tpu.memory_space<vmem>>, vector<32x60xf32>
    %cst = arith.constant dense<0.000000e+00> : vector<8x60xf32>
    %2 = tpu.matmul %0, %1, %cst {dimension_numbers = #tpu.dot_dimension_numbers<[1], [0], [0], [1], [0, 0, 1, 1], [], []>} : vector<8x32xf32>, vector<32x60xf32>, vector<8x60xf32> -> vector<8x60xf32>
    %c0_3 = arith.constant 0 : index
    %c0_4 = arith.constant 0 : index
    %3 = vector.load %arg3[%c0_3, %c0_4] : memref<1x60xf32, #tpu.memory_space<vmem>>, vector<1x60xf32>
    %4 = vector.broadcast %3 : vector<1x60xf32> to vector<8x60xf32>
    %5 = arith.addf %2, %4 : vector<8x60xf32>
    %c0_5 = arith.constant 0 : index
    %c0_6 = arith.constant 0 : index
    %6 = vector.load %arg4[%c0_5, %c0_6] : memref<8x60xf32, #tpu.memory_space<vmem>>, vector<8x60xf32>
    tpu.vector_store %arg4[%c0_5, %c0_6], %5 {strides = array<i32>} : memref<8x60xf32, #tpu.memory_space<vmem>>, vector<8x60xf32>,
    return
  }
  func.func @transform_0(%arg0: i32) -> (i32, i32) {
    %c0_i32 = arith.constant 0 : i32
    %c0_i32_0 = arith.constant 0 : i32
    return %arg0, %c0_i32 : i32, i32
  }
  func.func @transform_1(%arg0: i32) -> (i32, i32) {
    %c0_i32 = arith.constant 0 : i32
    %c0_i32_0 = arith.constant 0 : i32
    %c0_i32_1 = arith.constant 0 : i32
    return %c0_i32, %c0_i32_0 : i32, i32
  }
  func.func @transform_2(%arg0: i32) -> (i32, i32) {
    %c0_i32 = arith.constant 0 : i32
    %c0_i32_0 = arith.constant 0 : i32
    %c0_i32_1 = arith.constant 0 : i32
    return %c0_i32, %c0_i32_0 : i32, i32
  }
  func.func @transform_3(%arg0: i32) -> (i32, i32) {
    %c0_i32 = arith.constant 0 : i32
    %c0_i32_0 = arith.constant 0 : i32
    return %arg0, %c0_i32 : i32, i32
  }
}

module attributes {stable_mosaic.version = 11 : i64} {
  func.func @_attn_layer_kernel(%arg0: i32, %arg1: memref<1x8x32xf32, #tpu.memory_space<vmem>>, %arg2: memref<1x8x32xf32, #tpu.memory_space<vmem>>, %arg3: memref<1x8x32xf32, #tpu.memory_space<vmem>>, %arg4: memref<1x1x8xf32, #tpu.memory_space<vmem>>, %arg5: memref<32x32xf32, #tpu.memory_space<vmem>>, %arg6: memref<1x32xf32, #tpu.memory_space<vmem>>, %arg7: memref<1x32xf32, #tpu.memory_space<vmem>>, %arg8: memref<1x32xf32, #tpu.memory_space<vmem>>, %arg9: memref<1x8x32xf32, #tpu.memory_space<vmem>>) attributes {dimension_semantics = [#tpu.dimension_semantics<parallel>], iteration_bounds = array<i64: 2>, scalar_prefetch = 0 : i64, scratch_operands = 0 : i64, tpu.core_type = #tpu.core_type<tc>, window_params = [{transform_indices = @transform_0, window_bounds = array<i64: 1, 8, 32>}, {transform_indices = @transform_1, window_bounds = array<i64: 1, 8, 32>}, {transform_indices = @transform_2, window_bounds = array<i64: 1, 8, 32>}, {transform_indices = @transform_3, window_bounds = array<i64: 1, 1, 8>}, {pipeline_mode = #tpu.pipeline_mode<synchronous>, transform_indices = @transform_4, window_bounds = array<i64: 32, 32>}, {pipeline_mode = #tpu.pipeline_mode<synchronous>, transform_indices = @transform_5, window_bounds = array<i64: 1, 32>}, {pipeline_mode = #tpu.pipeline_mode<synchronous>, transform_indices = @transform_6, window_bounds = array<i64: 1, 32>}, {pipeline_mode = #tpu.pipeline_mode<synchronous>, transform_indices = @transform_7, window_bounds = array<i64: 1, 32>}, {transform_indices = @transform_8, window_bounds = array<i64: 1, 8, 32>}]} {
    %c0 = arith.constant 0 : index
    %c0_0 = arith.constant 0 : index
    %c0_1 = arith.constant 0 : index
    %0 = vector.load %arg1[%c0, %c0_0, %c0_1] : memref<1x8x32xf32, #tpu.memory_space<vmem>>, vector<1x8x32xf32>
    %1 = vector.shape_cast %0 : vector<1x8x32xf32> to vector<8x32xf32>
    %c0_2 = arith.constant 0 : index
    %c0_3 = arith.constant 0 : index
    %c0_4 = arith.constant 0 : index
    %2 = vector.load %arg2[%c0_2, %c0_3, %c0_4] : memref<1x8x32xf32, #tpu.memory_space<vmem>>, vector<1x8x32xf32>
    %3 = vector.shape_cast %2 : vector<1x8x32xf32> to vector<8x32xf32>
    %c0_5 = arith.constant 0 : index
    %c0_6 = arith.constant 0 : index
    %c0_7 = arith.constant 0 : index
    %4 = vector.load %arg3[%c0_5, %c0_6, %c0_7] : memref<1x8x32xf32, #tpu.memory_space<vmem>>, vector<1x8x32xf32>
    %5 = vector.shape_cast %4 : vector<1x8x32xf32> to vector<8x32xf32>
    %c0_8 = arith.constant 0 : index
    %c0_9 = arith.constant 0 : index
    %6 = vector.load %arg5[%c0_8, %c0_9] : memref<32x32xf32, #tpu.memory_space<vmem>>, vector<32x32xf32>
    %c0_10 = arith.constant 0 : index
    %c0_11 = arith.constant 0 : index
    %c0_12 = arith.constant 0 : index
    %7 = vector.load %arg4[%c0_10, %c0_11, %c0_12] : memref<1x1x8xf32, #tpu.memory_space<vmem>>, vector<1x1x8xf32>
    %8 = vector.shape_cast %7 : vector<1x1x8xf32> to vector<1x8xf32>
    %cst = arith.constant 0.000000e+00 : f32
    %9 = vector.broadcast %cst : f32 to vector<1x8xf32>
    %10 = arith.cmpf one, %8, %9 : vector<1x8xf32>
    %11 = vector.shape_cast %10 : vector<1x8xi1> to vector<1x8xi1>
    %12 = vector.broadcast %11 : vector<1x8xi1> to vector<8x8xi1>
    %13 = tpu.iota {dimensions = array<i32: 0>} : vector<8x8xi32>
    %14 = tpu.iota {dimensions = array<i32: 1>} : vector<8x8xi32>
    %15 = arith.cmpi sge, %13, %14 : vector<8x8xi32>
    %16 = arith.andi %12, %15 : vector<8x8xi1>
    %cst_13 = arith.constant 0.000000e+00 : f32
    %17 = vector.broadcast %cst_13 : f32 to vector<8x32xf32>
    %18 = vector.extract_strided_slice %1 {offsets = [0, 0], sizes = [8, 8], strides = [1, 1]} : vector<8x32xf32> to vector<8x8xf32>
    %19 = vector.extract_strided_slice %3 {offsets = [0, 0], sizes = [8, 8], strides = [1, 1]} : vector<8x32xf32> to vector<8x8xf32>
    %20 = vector.extract_strided_slice %5 {offsets = [0, 0], sizes = [8, 8], strides = [1, 1]} : vector<8x32xf32> to vector<8x8xf32>
    %cst_14 = arith.constant dense<0.000000e+00> : vector<8x8xf32>
    %21 = tpu.matmul %18, %19, %cst_14 {dimension_numbers = #tpu.dot_dimension_numbers<[1], [1], [0], [0], [0, 0, 1, 0], [], []>} : vector<8x8xf32>, vector<8x8xf32>, vector<8x8xf32> -> vector<8x8xf32>
    %cst_15 = arith.constant -1.000000e+20 : f32
    %22 = vector.broadcast %cst_15 : f32 to vector<8x8xf32>
    %23 = arith.select %16, %21, %22 : vector<8x8xi1>, vector<8x8xf32>
    %cst_16 = arith.constant 0.353553385 : f32
    %24 = vector.broadcast %cst_16 : f32 to vector<8x8xf32>
    %25 = arith.mulf %23, %24 : vector<8x8xf32>
    %cst_17 = arith.constant dense<0xFF800000> : vector<8xf32>
    %26 = vector.multi_reduction <maximumf>, %25, %cst_17 [1] : vector<8x8xf32> to vector<8xf32>
    %27 = vector.shape_cast %26 : vector<8xf32> to vector<8x1xf32>
    %28 = vector.broadcast %27 : vector<8x1xf32> to vector<8x8xf32>
    %29 = arith.subf %25, %28 : vector<8x8xf32>
    %30 = math.exp %29 : vector<8x8xf32>
    %cst_18 = arith.constant dense<0.000000e+00> : vector<8xf32>
    %31 = vector.multi_reduction <add>, %30, %cst_18 [1] : vector<8x8xf32> to vector<8xf32>
    %32 = vector.shape_cast %31 : vector<8xf32> to vector<8x1xf32>
    %33 = tpu.reciprocal %32 {approx = true} : vector<8x1xf32> -> vector<8x1xf32>
    %34 = vector.broadcast %33 : vector<8x1xf32> to vector<8x8xf32>
    %35 = arith.mulf %30, %34 : vector<8x8xf32>
    %cst_19 = arith.constant dense<0.000000e+00> : vector<8x8xf32>
    %36 = tpu.matmul %35, %20, %cst_19 {dimension_numbers = #tpu.dot_dimension_numbers<[1], [0], [0], [1], [0, 0, 1, 1], [], []>} : vector<8x8xf32>, vector<8x8xf32>, vector<8x8xf32> -> vector<8x8xf32>
    %37 = vector.extract_strided_slice %6 {offsets = [0, 0], sizes = [8, 32], strides = [1, 1]} : vector<32x32xf32> to vector<8x32xf32>
    %cst_20 = arith.constant dense<0.000000e+00> : vector<8x32xf32>
    %38 = tpu.matmul %36, %37, %cst_20 {dimension_numbers = #tpu.dot_dimension_numbers<[1], [0], [0], [1], [0, 0, 1, 1], [], []>} : vector<8x8xf32>, vector<8x32xf32>, vector<8x32xf32> -> vector<8x32xf32>
    %39 = arith.addf %17, %38 : vector<8x32xf32>
    %40 = vector.extract_strided_slice %1 {offsets = [0, 8], sizes = [8, 8], strides = [1, 1]} : vector<8x32xf32> to vector<8x8xf32>
    %41 = vector.extract_strided_slice %3 {offsets = [0, 8], sizes = [8, 8], strides = [1, 1]} : vector<8x32xf32> to vector<8x8xf32>
    %42 = vector.extract_strided_slice %5 {offsets = [0, 8], sizes = [8, 8], strides = [1, 1]} : vector<8x32xf32> to vector<8x8xf32>
    %cst_21 = arith.constant dense<0.000000e+00> : vector<8x8xf32>
    %43 = tpu.matmul %40, %41, %cst_21 {dimension_numbers = #tpu.dot_dimension_numbers<[1], [1], [0], [0], [0, 0, 1, 0], [], []>} : vector<8x8xf32>, vector<8x8xf32>, vector<8x8xf32> -> vector<8x8xf32>
    %cst_22 = arith.constant -1.000000e+20 : f32
    %44 = vector.broadcast %cst_22 : f32 to vector<8x8xf32>
    %45 = arith.select %16, %43, %44 : vector<8x8xi1>, vector<8x8xf32>
    %cst_23 = arith.constant 0.353553385 : f32
    %46 = vector.broadcast %cst_23 : f32 to vector<8x8xf32>
    %47 = arith.mulf %45, %46 : vector<8x8xf32>
    %cst_24 = arith.constant dense<0xFF800000> : vector<8xf32>
    %48 = vector.multi_reduction <maximumf>, %47, %cst_24 [1] : vector<8x8xf32> to vector<8xf32>
    %49 = vector.shape_cast %48 : vector<8xf32> to vector<8x1xf32>
    %50 = vector.broadcast %49 : vector<8x1xf32> to vector<8x8xf32>
    %51 = arith.subf %47, %50 : vector<8x8xf32>
    %52 = math.exp %51 : vector<8x8xf32>
    %cst_25 = arith.constant dense<0.000000e+00> : vector<8xf32>
    %53 = vector.multi_reduction <add>, %52, %cst_25 [1] : vector<8x8xf32> to vector<8xf32>
    %54 = vector.shape_cast %53 : vector<8xf32> to vector<8x1xf32>
    %55 = tpu.reciprocal %54 {approx = true} : vector<8x1xf32> -> vector<8x1xf32>
    %56 = vector.broadcast %55 : vector<8x1xf32> to vector<8x8xf32>
    %57 = arith.mulf %52, %56 : vector<8x8xf32>
    %cst_26 = arith.constant dense<0.000000e+00> : vector<8x8xf32>
    %58 = tpu.matmul %57, %42, %cst_26 {dimension_numbers = #tpu.dot_dimension_numbers<[1], [0], [0], [1], [0, 0, 1, 1], [], []>} : vector<8x8xf32>, vector<8x8xf32>, vector<8x8xf32> -> vector<8x8xf32>
    %59 = vector.extract_strided_slice %6 {offsets = [8, 0], sizes = [8, 32], strides = [1, 1]} : vector<32x32xf32> to vector<8x32xf32>
    %cst_27 = arith.constant dense<0.000000e+00> : vector<8x32xf32>
    %60 = tpu.matmul %58, %59, %cst_27 {dimension_numbers = #tpu.dot_dimension_numbers<[1], [0], [0], [1], [0, 0, 1, 1], [], []>} : vector<8x8xf32>, vector<8x32xf32>, vector<8x32xf32> -> vector<8x32xf32>
    %61 = arith.addf %39, %60 : vector<8x32xf32>
    %62 = vector.extract_strided_slice %1 {offsets = [0, 16], sizes = [8, 8], strides = [1, 1]} : vector<8x32xf32> to vector<8x8xf32>
    %63 = vector.extract_strided_slice %3 {offsets = [0, 16], sizes = [8, 8], strides = [1, 1]} : vector<8x32xf32> to vector<8x8xf32>
    %64 = vector.extract_strided_slice %5 {offsets = [0, 16], sizes = [8, 8], strides = [1, 1]} : vector<8x32xf32> to vector<8x8xf32>
    %cst_28 = arith.constant dense<0.000000e+00> : vector<8x8xf32>
    %65 = tpu.matmul %62, %63, %cst_28 {dimension_numbers = #tpu.dot_dimension_numbers<[1], [1], [0], [0], [0, 0, 1, 0], [], []>} : vector<8x8xf32>, vector<8x8xf32>, vector<8x8xf32> -> vector<8x8xf32>
    %cst_29 = arith.constant -1.000000e+20 : f32
    %66 = vector.broadcast %cst_29 : f32 to vector<8x8xf32>
    %67 = arith.select %16, %65, %66 : vector<8x8xi1>, vector<8x8xf32>
    %cst_30 = arith.constant 0.353553385 : f32
    %68 = vector.broadcast %cst_30 : f32 to vector<8x8xf32>
    %69 = arith.mulf %67, %68 : vector<8x8xf32>
    %cst_31 = arith.constant dense<0xFF800000> : vector<8xf32>
    %70 = vector.multi_reduction <maximumf>, %69, %cst_31 [1] : vector<8x8xf32> to vector<8xf32>
    %71 = vector.shape_cast %70 : vector<8xf32> to vector<8x1xf32>
    %72 = vector.broadcast %71 : vector<8x1xf32> to vector<8x8xf32>
    %73 = arith.subf %69, %72 : vector<8x8xf32>
    %74 = math.exp %73 : vector<8x8xf32>
    %cst_32 = arith.constant dense<0.000000e+00> : vector<8xf32>
    %75 = vector.multi_reduction <add>, %74, %cst_32 [1] : vector<8x8xf32> to vector<8xf32>
    %76 = vector.shape_cast %75 : vector<8xf32> to vector<8x1xf32>
    %77 = tpu.reciprocal %76 {approx = true} : vector<8x1xf32> -> vector<8x1xf32>
    %78 = vector.broadcast %77 : vector<8x1xf32> to vector<8x8xf32>
    %79 = arith.mulf %74, %78 : vector<8x8xf32>
    %cst_33 = arith.constant dense<0.000000e+00> : vector<8x8xf32>
    %80 = tpu.matmul %79, %64, %cst_33 {dimension_numbers = #tpu.dot_dimension_numbers<[1], [0], [0], [1], [0, 0, 1, 1], [], []>} : vector<8x8xf32>, vector<8x8xf32>, vector<8x8xf32> -> vector<8x8xf32>
    %81 = vector.extract_strided_slice %6 {offsets = [16, 0], sizes = [8, 32], strides = [1, 1]} : vector<32x32xf32> to vector<8x32xf32>
    %cst_34 = arith.constant dense<0.000000e+00> : vector<8x32xf32>
    %82 = tpu.matmul %80, %81, %cst_34 {dimension_numbers = #tpu.dot_dimension_numbers<[1], [0], [0], [1], [0, 0, 1, 1], [], []>} : vector<8x8xf32>, vector<8x32xf32>, vector<8x32xf32> -> vector<8x32xf32>
    %83 = arith.addf %61, %82 : vector<8x32xf32>
    %84 = vector.extract_strided_slice %1 {offsets = [0, 24], sizes = [8, 8], strides = [1, 1]} : vector<8x32xf32> to vector<8x8xf32>
    %85 = vector.extract_strided_slice %3 {offsets = [0, 24], sizes = [8, 8], strides = [1, 1]} : vector<8x32xf32> to vector<8x8xf32>
    %86 = vector.extract_strided_slice %5 {offsets = [0, 24], sizes = [8, 8], strides = [1, 1]} : vector<8x32xf32> to vector<8x8xf32>
    %cst_35 = arith.constant dense<0.000000e+00> : vector<8x8xf32>
    %87 = tpu.matmul %84, %85, %cst_35 {dimension_numbers = #tpu.dot_dimension_numbers<[1], [1], [0], [0], [0, 0, 1, 0], [], []>} : vector<8x8xf32>, vector<8x8xf32>, vector<8x8xf32> -> vector<8x8xf32>
    %cst_36 = arith.constant -1.000000e+20 : f32
    %88 = vector.broadcast %cst_36 : f32 to vector<8x8xf32>
    %89 = arith.select %16, %87, %88 : vector<8x8xi1>, vector<8x8xf32>
    %cst_37 = arith.constant 0.353553385 : f32
    %90 = vector.broadcast %cst_37 : f32 to vector<8x8xf32>
    %91 = arith.mulf %89, %90 : vector<8x8xf32>
    %cst_38 = arith.constant dense<0xFF800000> : vector<8xf32>
    %92 = vector.multi_reduction <maximumf>, %91, %cst_38 [1] : vector<8x8xf32> to vector<8xf32>
    %93 = vector.shape_cast %92 : vector<8xf32> to vector<8x1xf32>
    %94 = vector.broadcast %93 : vector<8x1xf32> to vector<8x8xf32>
    %95 = arith.subf %91, %94 : vector<8x8xf32>
    %96 = math.exp %95 : vector<8x8xf32>
    %cst_39 = arith.constant dense<0.000000e+00> : vector<8xf32>
    %97 = vector.multi_reduction <add>, %96, %cst_39 [1] : vector<8x8xf32> to vector<8xf32>
    %98 = vector.shape_cast %97 : vector<8xf32> to vector<8x1xf32>
    %99 = tpu.reciprocal %98 {approx = true} : vector<8x1xf32> -> vector<8x1xf32>
    %100 = vector.broadcast %99 : vector<8x1xf32> to vector<8x8xf32>
    %101 = arith.mulf %96, %100 : vector<8x8xf32>
    %cst_40 = arith.constant dense<0.000000e+00> : vector<8x8xf32>
    %102 = tpu.matmul %101, %86, %cst_40 {dimension_numbers = #tpu.dot_dimension_numbers<[1], [0], [0], [1], [0, 0, 1, 1], [], []>} : vector<8x8xf32>, vector<8x8xf32>, vector<8x8xf32> -> vector<8x8xf32>
    %103 = vector.extract_strided_slice %6 {offsets = [24, 0], sizes = [8, 32], strides = [1, 1]} : vector<32x32xf32> to vector<8x32xf32>
    %cst_41 = arith.constant dense<0.000000e+00> : vector<8x32xf32>
    %104 = tpu.matmul %102, %103, %cst_41 {dimension_numbers = #tpu.dot_dimension_numbers<[1], [0], [0], [1], [0, 0, 1, 1], [], []>} : vector<8x8xf32>, vector<8x32xf32>, vector<8x32xf32> -> vector<8x32xf32>
    %105 = arith.addf %83, %104 : vector<8x32xf32>
    %c0_42 = arith.constant 0 : index
    %c0_43 = arith.constant 0 : index
    %106 = vector.load %arg6[%c0_42, %c0_43] : memref<1x32xf32, #tpu.memory_space<vmem>>, vector<1x32xf32>
    %107 = vector.broadcast %106 : vector<1x32xf32> to vector<8x32xf32>
    %108 = arith.addf %105, %107 : vector<8x32xf32>
    %109 = arith.addf %108, %1 : vector<8x32xf32>
    %cst_44 = arith.constant dense<0.000000e+00> : vector<8xf32>
    %110 = vector.multi_reduction <add>, %109, %cst_44 [1] : vector<8x32xf32> to vector<8xf32>
    %111 = vector.shape_cast %110 : vector<8xf32> to vector<8x1xf32>
    %cst_45 = arith.constant 3.200000e+01 : f32
    %112 = vector.broadcast %cst_45 : f32 to vector<8x1xf32>
    %113 = arith.divf %111, %112 : vector<8x1xf32>
    %114 = vector.broadcast %113 : vector<8x1xf32> to vector<8x32xf32>
    %115 = arith.subf %109, %114 : vector<8x32xf32>
    %116 = arith.mulf %115, %115 : vector<8x32xf32>
    %cst_46 = arith.constant dense<0.000000e+00> : vector<8xf32>
    %117 = vector.multi_reduction <add>, %116, %cst_46 [1] : vector<8x32xf32> to vector<8xf32>
    %118 = vector.shape_cast %117 : vector<8xf32> to vector<8x1xf32>
    %cst_47 = arith.constant 3.200000e+01 : f32
    %119 = vector.broadcast %cst_47 : f32 to vector<8x1xf32>
    %120 = arith.divf %118, %119 : vector<8x1xf32>
    %121 = vector.broadcast %113 : vector<8x1xf32> to vector<8x32xf32>
    %122 = arith.subf %109, %121 : vector<8x32xf32>
    %cst_48 = arith.constant 9.99999974E-6 : f32
    %123 = vector.broadcast %cst_48 : f32 to vector<8x1xf32>
    %124 = arith.addf %120, %123 : vector<8x1xf32>
    %125 = math.rsqrt %124 : vector<8x1xf32>
    %126 = vector.broadcast %125 : vector<8x1xf32> to vector<8x32xf32>
    %127 = arith.mulf %122, %126 : vector<8x32xf32>
    %c0_49 = arith.constant 0 : index
    %c0_50 = arith.constant 0 : index
    %128 = vector.load %arg7[%c0_49, %c0_50] : memref<1x32xf32, #tpu.memory_space<vmem>>, vector<1x32xf32>
    %129 = vector.broadcast %128 : vector<1x32xf32> to vector<8x32xf32>
    %130 = arith.mulf %127, %129 : vector<8x32xf32>
    %c0_51 = arith.constant 0 : index
    %c0_52 = arith.constant 0 : index
    %131 = vector.load %arg8[%c0_51, %c0_52] : memref<1x32xf32, #tpu.memory_space<vmem>>, vector<1x32xf32>
    %132 = vector.broadcast %131 : vector<1x32xf32> to vector<8x32xf32>
    %133 = arith.addf %130, %132 : vector<8x32xf32>
    %c0_53 = arith.constant 0 : index
    %c0_54 = arith.constant 0 : index
    %c0_55 = arith.constant 0 : index
    %134 = vector.load %arg9[%c0_53, %c0_54, %c0_55] : memref<1x8x32xf32, #tpu.memory_space<vmem>>, vector<1x8x32xf32>
    %135 = vector.shape_cast %134 : vector<1x8x32xf32> to vector<8x32xf32>
    %136 = vector.shape_cast %133 : vector<8x32xf32> to vector<1x8x32xf32>
    tpu.vector_store %arg9[%c0_53, %c0_54, %c0_55], %136 {strides = array<i32>} : memref<1x8x32xf32, #tpu.memory_space<vmem>>, vector<1x8x32xf32>,
    return
  }
  func.func @transform_0(%arg0: i32) -> (i32, i32, i32) {
    %c0_i32 = arith.constant 0 : i32
    %c0_i32_0 = arith.constant 0 : i32
    %c0_i32_1 = arith.constant 0 : i32
    return %arg0, %c0_i32, %c0_i32_0 : i32, i32, i32
  }
  func.func @transform_1(%arg0: i32) -> (i32, i32, i32) {
    %c0_i32 = arith.constant 0 : i32
    %c0_i32_0 = arith.constant 0 : i32
    %c0_i32_1 = arith.constant 0 : i32
    return %arg0, %c0_i32, %c0_i32_0 : i32, i32, i32
  }
  func.func @transform_2(%arg0: i32) -> (i32, i32, i32) {
    %c0_i32 = arith.constant 0 : i32
    %c0_i32_0 = arith.constant 0 : i32
    %c0_i32_1 = arith.constant 0 : i32
    return %arg0, %c0_i32, %c0_i32_0 : i32, i32, i32
  }
  func.func @transform_3(%arg0: i32) -> (i32, i32, i32) {
    %c0_i32 = arith.constant 0 : i32
    %c0_i32_0 = arith.constant 0 : i32
    %c0_i32_1 = arith.constant 0 : i32
    return %arg0, %c0_i32, %c0_i32_0 : i32, i32, i32
  }
  func.func @transform_4(%arg0: i32) -> (i32, i32) {
    %c0_i32 = arith.constant 0 : i32
    %c0_i32_0 = arith.constant 0 : i32
    %c0_i32_1 = arith.constant 0 : i32
    return %c0_i32, %c0_i32_0 : i32, i32
  }
  func.func @transform_5(%arg0: i32) -> (i32, i32) {
    %c0_i32 = arith.constant 0 : i32
    %c0_i32_0 = arith.constant 0 : i32
    %c0_i32_1 = arith.constant 0 : i32
    return %c0_i32, %c0_i32_0 : i32, i32
  }
  func.func @transform_6(%arg0: i32) -> (i32, i32) {
    %c0_i32 = arith.constant 0 : i32
    %c0_i32_0 = arith.constant 0 : i32
    %c0_i32_1 = arith.constant 0 : i32
    return %c0_i32, %c0_i32_0 : i32, i32
  }
  func.func @transform_7(%arg0: i32) -> (i32, i32) {
    %c0_i32 = arith.constant 0 : i32
    %c0_i32_0 = arith.constant 0 : i32
    %c0_i32_1 = arith.constant 0 : i32
    return %c0_i32, %c0_i32_0 : i32, i32
  }
  func.func @transform_8(%arg0: i32) -> (i32, i32, i32) {
    %c0_i32 = arith.constant 0 : i32
    %c0_i32_0 = arith.constant 0 : i32
    %c0_i32_1 = arith.constant 0 : i32
    return %arg0, %c0_i32, %c0_i32_0 : i32, i32, i32
  }
}

</mosaic_0001>

<bundles_post_ra>
// kernel: transformer_forward.21
= control target key start
LH: loop header
LB: loop body
LE: loop exit
PB: predicated region body
PF: predicated region fallthrough
CT: control target
= control target key end

     0   :  { %8 = vsyncpa [#allocation3], 0  ;;  %s606_s0 = inlined_call_operand.vmem [shape: f32[16,32], index: 0, kind: input, shape index: {}]   ;;  %s607_s1 = inlined_call_operand.vmem [shape: f32[32,60], index: 1, kind: input, shape index: {}]   ;;  %s608_s2 = inlined_call_operand.vmem [shape: f32[1,60], index: 2, kind: input, shape index: {}]   ;;  %s609_s3 = inlined_call_operand.hbm [shape: f32[16,60], index: 3, kind: output, shape index: {}]  }
   0x1   :  { %10 = vsyncpa [#allocation3 + $0x1], 0  ;;  %s491_s12 = smov 0   ;;  %s493_s13 = smov 0  }
   0x2   :  { %s495_s14 = smov 0   ;;  %s497_s15 = smov 0  }
   0x3 LB: > { %s512_s16 = sadd.s32 4294967295, %s465_s15   ;;  %s327_s17 = sadd.s32 4294967294, %s465_s15   ;;  %s465_s15 = sphi %s497_s15, %s615_s15   ;;  %s461_s14 = sphi %s495_s14, %s614_s14   ;;  %s457_s13 = sphi %s493_s13, %s613_s13   ;;  %s453_s12 = sphi %s491_s12, %s612_s12  }
   0x4   : > { %s516_s18 = sadd.s32 1, %s465_s15   ;;  %s91_s19 = sadd.s32 1, %s461_s14 }
   0x5   : > { %s88_s20 = ssub.s32 %s465_s15, %s516_s18  ;;  %p101_p0 = scmp.ne.s32.totalorder %s461_s14, %s457_s13 }
   0x6   : > { %p89_p1 = scmp.eq.s32.totalorder %s88_s20, 0  ;;  %p102_p2 = scmp.eq.s32.totalorder %s512_s16, 1 }
   0x7   : > { %p107_p3 = scmp.ne.s32.totalorder %s457_s13, %s453_s12  ;;  %p108_p4 = scmp.eq.s32.totalorder %s327_s17, 1 }
   0x8   : > { %s527_s21 = scalar_select %p89_p1, %s461_s14, %s91_s19  }
   0x9   : > { %p529_p5 = por %p102_p2, %p101_p0  ;;  %p533_p6 = por %p108_p4, %p107_p3 }
   0xa   : > { %p330_p7 = scmp.ge.s32.totalorder %s465_s15, 1  ;;  %p139_p8 = scmp.lt.s32.totalorder %s465_s15, 3 }
   0xc   : > { %p140_p9 = pnand %p330_p7, %p139_p8 }
   0xd   : > { %v167_v0 = vld [vmem:[%s607_s1] sm:$0xff] (!%p140_p9)  ;;  %v168_v1 = vld [vmem:[%s607_s1 + $0x8] sm:$0xff] (!%p140_p9)  ;;  %v169_v2 = vld [vmem:[%s607_s1 + $0x10] sm:$0xff] (!%p140_p9)  ;;  %v467_v3 = vmov (!%p140_p9), 0.0|0.0   ;;  %vm468_vm0 = vmmov (!%p140_p9), 0   ;;  %v469_v6 = vmov (!%p140_p9), 0.0  }
   0xe   : > { %143 = sbr.rel (%p140_p9) target bundleno = 254 (0xfe), region = 32  ;;  %355 = vmatprep.subr.bf16.mxu0 (!%p140_p9), %v467_v3  ;;  %v356_v4 = vpack.c.bf16 (!%p140_p9), %v168_v1, %v167_v0  ;;  %v170_v5 = vld [vmem:[%s607_s1 + $0x18] sm:$0xff] (!%p140_p9)  ;;  %352 = vmatprep.mubr.msk.f32.mxu0 (!%p140_p9), %vm468_vm0, %v469_v6  ;;  %p162_p10 = scmp.lt.s32.totalorder (!%p140_p9), %s512_s16, 1  ;;  %vm178_vm1 = vcmask (!%p140_p9), 261120   ;;  %v333_v9 = vld [vmem:[%s608_s2] ss:$0 sm:$0xff] (!%p140_p9) }
   0xf   : > { %v359_v7 = vpack.c.bf16 (!%p140_p9), %v170_v5, %v169_v2  ;;  %s159_s10 = sand.u32 (!%p140_p9), 1, %s457_s13   ;;  %s336_s20 = sshll.u32 (!%p140_p9), %s512_s16, 7  ;;  %vm252_vm2 = vcmask (!%p140_p9), 490496  }
  0x10   : > { %357 = vmatpush3.bf16.msra.mxu0 (!%p140_p9), %v356_v4  ;;  %s331_s11 = sshll.u32 (!%p140_p9), %s159_s10, 3  ;;  %s564_s28 = scalar_lea.hbm (!%p140_p9), %s609_s3, %s336_s20 }
  0x11   : > { %358 = vmatprep.subr.bf16.mxu0 (!%p140_p9), %v467_v3  ;;  %s161_s24 = scalar_lea.vmem (!%p140_p9), [#allocation2], %s331_s11  ;;  %s255_s29 = scalar_lea.sflag (!%p140_p9), [#allocation3], %s159_s10 }
  0x12   : > { %s268_s25 = sshll.u32 (!%p140_p9), %s161_s24, 4  ;;  %s566_s25 = int_to_ptr.vmem [resolvable:$true] %s268_s25 }
  0x13   : > { %s403_s30 = scalar_lea.vmem (!%p140_p9), %s566_s25, 128 }
  0x14   : > { %360 = vmatpush3.bf16.msra.mxu0 (!%p140_p9), %v359_v7  ;;  %p404_p11 = scmp.ne.s32.totalorder (!%p140_p9), %s566_s25, %s403_s30 }
  0x15   : > { %s163_s5 = scalar_select %p162_p10, %s512_s16, 1 }
  0x16   : > { %p405_p12 = pnand %p404_p11, %p529_p5  ;;  %s470_s16 = smov [#allocation2]  }
  0x17   : > { %s332_s6 = sshll.u32 %s163_s5, 3  ;;  %s407_s4 = sshll.u32 %s470_s16, 4  ;;  %s408_s4 = int_to_ptr.vmem [resolvable:$false] %s407_s4 }
  0x18   : > { %s165_s9 = scalar_lea.vmem %s606_s0, %s332_s6  ;;  %p406_p13 = pneg %p405_p12 }
  0x19   : > { %v166_v8 = vld [vmem:[%s165_s9] sm:$0xff]  ;;  %s409_s5 = scalar_lea.vmem %s408_s4, 256  ;;  %p410_p0 = scmp.lt.s32.totalorder %s566_s25, %s408_s4 }
  0x1a   : > { %353 = vmatmul.mubr.msk.f32.vlgmr.msra.gmra.mrb[0].mxu0 %vm178_vm1, %v166_v8  ;;  %p411_p1 = scmp.lt.s32.totalorder %s409_s5, %s403_s30 }
  0x1c   : > { %p412_p2 = por %p411_p1, %p410_p0 }
  0x1e   : > { %p413_p3 = pnand %p412_p2, %p406_p13 }
  0xed   : > { %v248_v10 = vpop.f32.mrb[0].mxu0 }
  0xee   : > { %v249_v11 = vadd.f32 %v333_v9, %v248_v10  ;;  %v354_v12 = vpop.f32.mrb[1].mxu0 }
  0xf0   : > { %253 = vst.msk [vmem:[%s161_s24] sm:$0xff] %vm252_vm2, %v249_v11 }
  0xf1   : > { %416 = shalt.err (!%p413_p3)
}
  0xf2   : > { %s417_s6 = scalar_lea.hbm %s564_s28, 128  ;;  %s421_s9 = scalar_lea.hbm %s609_s3, 256 }
  0xf3   : > { %p418_p4 = scmp.ne.s32.totalorder %s564_s28, %s417_s6  ;;  %p422_p9 = scmp.lt.u32.totalorder %s564_s28, %s609_s3 }
  0xf4   : > { %p423_p10 = scmp.lt.u32.totalorder %s421_s9, %s417_s6  ;;  %p425_p12 = scmp.lt.u32.totalorder %s417_s6, %s564_s28 }
  0xf5   : > { %p419_p7 = pnand %p418_p4, %p529_p5 }
  0xf6   : > { %p424_p11 = por %p423_p10, %p422_p9 }
  0xf7   : > { %p420_p8 = pneg %p419_p7 }
  0xf8   : > { %p426_p13 = por %p425_p12, %p424_p11 }
  0xfa   : > { %p427_p0 = pnand %p426_p13, %p420_p8 }
  0xfc   : > { %430 = shalt.err (!%p427_p0)
}
  0xfd   : > { %361 = dma.vmem_to_hbm [thread:$0]  (%p529_p5), %s566_s25, 128, %s564_s28, %s255_s29  }
  0xfe PF: > { %p367_p1 = scmp.ge.s32.totalorder %s465_s15, 2  ;;  %s280_s17 = sand.u32 1, %s453_s12  }
  0xff   : > { %s281_s19 = scalar_lea.sflag [#allocation3], %s280_s17 }
 0x100   : > { %p364_p2 = pnand %p367_p1, %p533_p6 }
 0x102   : > { %448 = dma.done.wait (!%p364_p2), %s281_s19, 128  }
 0x103   : > { %450 = vsyncadd (!%p364_p2), %s281_s19, 4294967168  ;;  %p13_p3 = scmp.ge.s32.totalorder %s516_s18, 4   ;;  %s612_s12 = smov %s457_s13 }
 0x104   : > { %s613_s13 = smov %s461_s14  ;;  %s614_s14 = smov %s527_s21 }
 0x105   : > { %s615_s15 = smov %s516_s18  ;;  %15 = sbr.rel (!%p13_p3) target bundleno = 3 (0x3), region = 67 }
 0x10c   :  { %286 = vsyncpa [#allocation3], 1 }
 0x10d   :  { %288 = vsyncpa [#allocation3 + $0x1], 1 }

// kernel: transformer_forward.12
= control target key start
LH: loop header
LB: loop body
LE: loop exit
PB: predicated region body
PF: predicated region fallthrough
CT: control target
= control target key end

     0   :  { %s676_s24 = smov 0   ;;  %s752_s0 = inlined_call_operand.vmem [shape: f32[16,32], index: 0, kind: input, shape index: {}]   ;;  %s753_s1 = inlined_call_operand.vmem [shape: f32[32,64], index: 1, kind: input, shape index: {}]   ;;  %s754_s2 = inlined_call_operand.vmem [shape: f32[1,64], index: 2, kind: input, shape index: {}]   ;;  %s755_s3 = inlined_call_operand.vmem [shape: f32[64,32], index: 3, kind: input, shape index: {}]   ;;  %s756_s4 = inlined_call_operand.vmem [shape: f32[1,32], index: 4, kind: input, shape index: {}]   ;;  %s757_s5 = inlined_call_operand.vmem [shape: f32[1,32], index: 5, kind: input, shape index: {}]   ;;  %s758_s6 = inlined_call_operand.vmem [shape: f32[1,32], index: 6, kind: input, shape index: {}]   ;;  %s759_s7 = inlined_call_operand.vmem [shape: f32[16,32], index: 7, kind: output, shape index: {}]  }
   0x1 LB: > { %s535_s25 = sadd.s32 4294967295, %s631_s24   ;;  %p539_p0 = scmp.ge.s32.totalorder %s631_s24, 1  ;;  %s631_s24 = sphi %s676_s24, %s17_s24  }
   0x2   : > { %p236_p1 = scmp.lt.s32.totalorder %s631_s24, 3 }
   0x4   : > { %p237_p2 = pnand %p539_p0, %p236_p1 }
   0x5   : > { %v275_v0 = vld [vmem:[%s753_s1] sm:$0xff] (!%p237_p2)  ;;  %v276_v1 = vld [vmem:[%s753_s1 + $0x8] sm:$0xff] (!%p237_p2)  ;;  %v277_v2 = vld [vmem:[%s753_s1 + $0x10] sm:$0xff] (!%p237_p2)  ;;  %v633_v3 = vmov (!%p237_p2), 0.0|0.0   ;;  %vm634_vm0 = vmmov (!%p237_p2), 0   ;;  %v635_v6 = vmov (!%p237_p2), 0.0  }
   0x6   : > { %240 = sbr.rel (%p237_p2) target bundleno = 763 (0x2fb), region = 48  ;;  %594 = vmatprep.subr.bf16.mxu0 (!%p237_p2), %v633_v3  ;;  %v595_v4 = vpack.c.bf16 (!%p237_p2), %v276_v1, %v275_v0  ;;  %v278_v5 = vld [vmem:[%s753_s1 + $0x18] sm:$0xff] (!%p237_p2)  ;;  %572 = vmatprep.mubr.msk.f32.mxu0 (!%p237_p2), %vm634_vm0, %v635_v6  ;;  %p266_p3 = scmp.lt.s32.totalorder (!%p237_p2), %s535_s25, 1  ;;  %v361_v7 = vld [vmem:[%s755_s3] sm:$0xff] (!%p237_p2)  ;;  %v362_v8 = vld [vmem:[%s755_s3 + $0x8] sm:$0xff] (!%p237_p2)  ;;  %vm286_vm1 = vcmask (!%p237_p2), 261120  }
   0x7   : > { %600 = vmatprep.subr.bf16.mxu1 (!%p237_p2), %v633_v3  ;;  %v601_v9 = vpack.c.bf16 (!%p237_p2), %v362_v8, %v361_v7  ;;  %v363_v10 = vld [vmem:[%s755_s3 + $0x10] sm:$0xff] (!%p237_p2)  ;;  %v364_v11 = vld [vmem:[%s755_s3 + $0x18] sm:$0xff] (!%p237_p2)  ;;  %591 = vmatprep.mubr.msk.f32.mxu1 (!%p237_p2), %vm634_vm0, %v635_v6  ;;  %v598_v12 = vpack.c.bf16 (!%p237_p2), %v278_v5, %v277_v2  ;;  %v365_v14 = vld [vmem:[%s755_s3 + $0x20] sm:$0xff] (!%p237_p2)  ;;  %vm376_vm2 = vcmask (!%p237_p2), 523264  }
   0x8   : > { %596 = vmatpush3.bf16.msra.mxu0 (!%p237_p2), %v595_v4  ;;  %v604_v13 = vpack.c.bf16 (!%p237_p2), %v364_v11, %v363_v10  ;;  %v366_v15 = vld [vmem:[%s755_s3 + $0x28] sm:$0xff] (!%p237_p2)  ;;  %v367_v18 = vld [vmem:[%s755_s3 + $0x30] sm:$0xff] (!%p237_p2)  ;;  %v368_v19 = vld [vmem:[%s755_s3 + $0x38] sm:$0xff] (!%p237_p2) }
   0x9   : > { %597 = vmatprep.subr.bf16.mxu0 (!%p237_p2), %v633_v3  ;;  %602 = vmatpush3.bf16.msra.mxu1 (!%p237_p2), %v601_v9  ;;  %v607_v17 = vpack.c.bf16 (!%p237_p2), %v366_v15, %v365_v14  ;;  %v610_v20 = vpack.c.bf16 (!%p237_p2), %v368_v19, %v367_v18  ;;  %v542_v21 = vld [vmem:[%s754_s2] ss:$0 sm:$0xff] (!%p237_p2) }
   0xa   : > { %603 = vmatprep.subr.bf16.mxu1 (!%p237_p2), %v633_v3  ;;  %v544_v26 = vld [vmem:[%s756_s4] ss:$0 sm:$0xff] (!%p237_p2) }
   0xb   : > { %v546_v41 = vld [vmem:[%s757_s5] ss:$0 sm:$0xff] (!%p237_p2) }
   0xc   : > { %599 = vmatpush3.bf16.msra.mxu0 (!%p237_p2), %v598_v12  ;;  %v547_v43 = vld [vmem:[%s758_s6] ss:$0 sm:$0xff] (!%p237_p2) }
   0xd   : > { %s761_s25 = smov (!%p266_p3, %s535_s25), 1  ;;  %605 = vmatpush3.bf16.msra.mxu1 %v604_v13 }
   0xe   : > { %s540_s19 = sshll.u32 %s761_s25, 3  ;;  %606 = vmatprep.subr.bf16.mxu1 %v633_v3 }
   0xf   : > { %s269_s28 = scalar_lea.vmem %s752_s0, %s540_s19  ;;  %s273_s21 = scalar_lea.vmem %s759_s7, %s540_s19 }
  0x10   : > { %v274_v16 = vld [vmem:[%s269_s28] sm:$0xff] }
  0x11   : > { %573 = vmatmul.mubr.msk.f32.vlgmr.msra.gmra.mrb[0].mxu0 %vm286_vm1, %v274_v16  ;;  %608 = vmatpush3.bf16.msra.mxu1 %v607_v17 }
  0x12   : > { %609 = vmatprep.subr.bf16.mxu1 %v633_v3 }
  0x15   : > { %611 = vmatpush3.bf16.msra.mxu1 %v610_v20 }
  0xe4   : > { %v356_v22 = vpop.f32.mrb[0].mxu0 }
  0xe5   : > { %v357_v23 = vadd.f32 %v542_v21, %v356_v22  ;;  %v574_v24 = vpop.f32.mrb[1].mxu0 }
  0xe7   : > { %v360_v25 = vmax.f32 %v357_v23, 0.0 }
  0xe9   : > { %592 = vmatmul.mubr.msk.f32.vlgmr.msra.gmra.mrb[0].mxu1 %vm376_vm2, %v360_v25 }
 0x1bc   : > { %v446_v27 = vpop.f32.mrb[0].mxu1 }
 0x1bd   : > { %v447_v28 = vadd.f32 %v544_v26, %v446_v27  ;;  %v593_v29 = vpop.f32.mrb[1].mxu1 }
 0x1bf   : > { %v450_v30 = vadd.f32 %v447_v28, %v274_v16 }
 0x1c1   : > { %v451_v31 = vsel %vm286_vm1, %v450_v30, 0.0 }
 0x1c2   : > { %452 = vadd.xlane.f32.xlu0 %v451_v31 }
 0x24f   : > { %v453_v32 = vpop.xlane.xlu0 %452 }
 0x250   : > { %v455_v33 = vmul.f32 0.03125, %v453_v32 }
 0x252   : > { %v456_v34 = vsub.f32 %v450_v30, %v455_v33 }
 0x254   : > { %v457_v35 = vmul.f32 %v456_v34, %v456_v34 }
 0x256   : > { %v458_v36 = vsel %vm286_vm1, %v457_v35, 0.0 }
 0x257   : > { %459 = vadd.xlane.f32.xlu0 %v458_v36 }
 0x2e4   : > { %v460_v37 = vpop.xlane.xlu0 %459 }
 0x2e5   : > { %v461_v38 = vmul.f32 0.03125, %v460_v37 }
 0x2e7   : > { %v462_v39 = vadd.f32 1e-05, %v461_v38 }
 0x2e9   : > { %623 = vrsqrt.f32 %v462_v39 }
 0x2f3   : > { %v624_v40 = vpop.eup %623 }
 0x2f4   : > { %v464_v42 = vmul.f32 %v624_v40, %v456_v34 }
 0x2f6   : > { %v472_v44 = vmul.f32 %v546_v41, %v464_v42 }
 0x2f8   : > { %v480_v45 = vadd.f32 %v547_v43, %v472_v44 }
 0x2fa   : > { %481 = vst.msk [vmem:[%s273_s21] sm:$0xff] %vm286_vm1, %v480_v45 }
 0x2fb PF: > { %s17_s24 = sadd.s32 1, %s631_s24  }
 0x2fc   : > { %p14_p4 = scmp.ge.s32.totalorder %s17_s24, 4  }
 0x2fe   :  { %16 = sbr.rel (!%p14_p4) target bundleno = 1 (0x1), region = 78 }

// kernel: transformer_forward.15
= control target key start
LH: loop header
LB: loop body
LE: loop exit
PB: predicated region body
PF: predicated region fallthrough
CT: control target
= control target key end

     0   :  { %s1661_s27 = smov 0   ;;  %s1814_s0 = inlined_call_operand.vmem [shape: f32[2,8,32], index: 0, kind: input, shape index: {}, may-alias: {0,1,2}]   ;;  %s1815_s1 = inlined_call_operand.vmem [shape: f32[2,8,32], index: 1, kind: input, shape index: {}, may-alias: {0,1,2}]   ;;  %s1816_s2 = inlined_call_operand.vmem [shape: f32[2,8,32], index: 2, kind: input, shape index: {}, may-alias: {0,1,2}]   ;;  %s1817_s3 = inlined_call_operand.vmem [shape: f32[2,1,8], index: 3, kind: input, shape index: {}]   ;;  %s1818_s4 = inlined_call_operand.vmem [shape: f32[32,32], index: 4, kind: input, shape index: {}]   ;;  %s1819_s5 = inlined_call_operand.vmem [shape: f32[1,32], index: 5, kind: input, shape index: {}]   ;;  %s1820_s6 = inlined_call_operand.vmem [shape: f32[1,32], index: 6, kind: input, shape index: {}]   ;;  %s1821_s7 = inlined_call_operand.vmem [shape: f32[1,32], index: 7, kind: input, shape index: {}]   ;;  %s1822_s8 = inlined_call_operand.vmem [shape: f32[2,8,32], index: 8, kind: output, shape index: {}]  }
   0x1 LB: > { %s1456_s28 = sadd.s32 4294967295, %s1608_s27   ;;  %p1460_p0 = scmp.ge.s32.totalorder %s1608_s27, 1  ;;  %s1608_s27 = sphi %s1661_s27, %s18_s27  }
   0x2   : > { %p287_p1 = scmp.lt.s32.totalorder %s1608_s27, 3 }
   0x4   : > { %p288_p2 = pnand %p1460_p0, %p287_p1 }
   0x5   : > { %p330_p3 = scmp.lt.s32.totalorder (!%p288_p2), %s1456_s28, 1  ;;  %v1610_v0 = vmov (!%p288_p2), 0.0   ;;  %vm1611_vm0 = vmmov (!%p288_p2), 0   ;;  %vm370_vm1 = vcmask (!%p288_p2), 64512   ;;  %v359_v3 = vlaneseq (!%p288_p2)  ;;  %s1613_s17 = smov (!%p288_p2), 120   ;;  %v353_v41 = vld [vmem:[%s1818_s4 + $0x8] sm:$0xff] (!%p288_p2) }
   0x6   : > { %291 = sbr.rel (%p288_p2) target bundleno = 3104 (0xc20), region = 52  ;;  %1510 = vmatprep.subr.mxu0 (!%p288_p2), %v1610_v0  ;;  %1512 = vmatprep.mubr.msk.f32.mxu0 (!%p288_p2), %vm1611_vm0, %v1610_v0  ;;  %v1612_v7 = vmov (!%p288_p2), 0   ;;  %s1614_s23 = smov (!%p288_p2), 112   ;;  %v352_v45 = vld [vmem:[%s1818_s4] sm:$0xff] (!%p288_p2)  ;;  %v355_v11 = vld [vmem:[%s1818_s4 + $0x18] sm:$0xff] (!%p288_p2)  ;;  %vm1338_vm6 = vcmask (!%p288_p2), 261120  }
   0x7   : > { %1515 = vmatprep.subr.mxu1 (!%p288_p2), %v1610_v0  ;;  %1517 = vmatprep.mubr.msk.f32.mxu1 (!%p288_p2), %vm1611_vm0, %v1610_v0  ;;  %v360_v5 = vshrl.u32 (!%p288_p2), %v359_v3, 7  ;;  %v367_v10 = vand.u32 (!%p288_p2), 127, %v359_v3  ;;  %s1615_s26 = smov (!%p288_p2), 104  }
   0x9   : > { %v361_v6 = vsub.s32 (!%p288_p2), 0, %v360_v5  ;;  %vm368_vm4 = vcmp.ge.s32.totalorder (!%p288_p2), %v360_v5, %v367_v10 }
   0xd   : > { %s1826_s28 = smov (!%p330_p3, %s1456_s28), 1 }
   0xe   : > { %s1675_s29 = sshll.u32 %s1826_s28, 3  ;;  %s344_s16 = scalar_lea.vmem %s1817_s3, %s1826_s28 }
   0xf   : > { %s337_s10 = scalar_lea.vmem %s1815_s1, %s1675_s29  ;;  %s333_s13 = scalar_lea.vmem %s1814_s0, %s1675_s29  ;;  %v356_v4 = vld [vmem:[%s344_s16] sm:$0x1] }
  0x10   : > { %v1681_v1 = vld [vmem:[%s337_s10] sm:$0xff]  ;;  %vm357_vm2 = vcmp.ne.f32.partialorder %v356_v4, 0.0  ;;  %s341_s20 = scalar_lea.vmem %s1816_s2, %s1675_s29  ;;  %s348_s19 = scalar_lea.vmem %s1822_s8, %s1675_s29 }
  0x11   : > { %1511 = vmatpush3.xpose.msk.msra.mxu0 %vm370_vm1, %v1681_v1  ;;  %v1689_v2 = vld [vmem:[%s333_s13] sm:$0xff]  ;;  %v358_v8 = vsel %vm357_vm2, 1, %v1612_v7  ;;  %535 = vrot.lane.b32.xlu1 %v1681_v1, %s1613_s17 }
  0x12   : > { %1525 = vmatprep.subr.mxu0 %v1610_v0  ;;  %v362_v9 = vrot.slane %v358_v8, %v361_v6  ;;  %v1715_v22 = vld [vmem:[%s341_s20] sm:$0xff] }
  0x13   : > { %1516 = vmatpush3.msra.mxu1 %v1715_v22 }
  0x14   : > { %1513 = vmatmul.mubr.msk.f32.vlgmr.msra.gmra.mrb[0].mxu0 %vm370_vm1, %v1689_v2  ;;  %vm363_vm3 = vcmp.eq.s32.totalorder %v362_v9, 1  ;;  %1520 = vmatprep.subr.mxu1 %v1610_v0  ;;  %v354_v9 = vld [vmem:[%s1818_s4 + $0x10] sm:$0xff] }
  0x15   : > { %1527 = vmatprep.mubr.msk.f32.mxu0 %vm1611_vm0, %v1610_v0  ;;  %vm1699_vm5 = vmand %vm363_vm3, %vm368_vm4  ;;  %533 = vrot.lane.b32.xlu1 %v1689_v2, %s1613_s17 }
  0x83   : > { %v536_v24 = vpop.permute.xlu1 %535 }
  0x87   : > { %v534_v27 = vpop.permute.xlu1 %533 }
  0xe7   : > { %v443_v12 = vpop.f32.mrb[0].mxu0 }
  0xe8   : > { %v447_v13 = vsel %vm1699_vm5, %v443_v12, -1e+20  ;;  %v1514_v14 = vpop.f32.mrb[1].mxu0 }
  0xe9   : > { %v448_v15 = vmul.f32 0.35355338, %v447_v13 }
  0xeb   : > { %v449_v16 = vsel %vm370_vm1, %v448_v15, -inf }
  0xec   : > { %450 = vmax.xlane.f32.xlu0 %v449_v16 }
 0x179   : > { %v451_v17 = vpop.xlane.xlu0 %450 }
 0x17a   : > { %v452_v18 = vsub.f32 %v448_v15, %v451_v17 }
 0x17c   : > { %v453_v19 = vmul.f32 1.442695, %v452_v18 }
 0x17e   : > { %1584 = vpow2.f32 %v453_v19 }
 0x188   : > { %v1585_v20 = vpop.eup %1584 }
 0x189   : > { %v455_v21 = vsel %vm370_vm1, %v1585_v20, 0.0 }
 0x18a   : > { %456 = vadd.xlane.f32.xlu0 %v455_v21 }
 0x217   : > { %v457_v23 = vpop.xlane.xlu0 %456 }
 0x218   : > { %1586 = vrcp.f32 %v457_v23 }
 0x222   : > { %v1587_v25 = vpop.eup %1586 }
 0x223   : > { %v459_v26 = vmul.f32 %v1587_v25, %v1585_v20 }
 0x225   : > { %1518 = vmatmul.mubr.msk.f32.vlgmr.msra.gmra.mrb[0].mxu1 %vm370_vm1, %v459_v26 }
 0x226   : > { %1521 = vmatpush3.xpose.msk.msra.mxu1 %vm370_vm1, %v536_v24  ;;  %1522 = vmatprep.mubr.msk.f32.mxu1 %vm1611_vm0, %v1610_v0 }
 0x227   : > { %1530 = vmatprep.subr.mxu1 %v1610_v0 }
 0x229   : > { %1523 = vmatmul.mubr.msk.f32.vlgmr.msra.gmra.mrb[2].mxu1 %vm370_vm1, %v534_v27 }
 0x22a   : > { %1532 = vmatprep.mubr.msk.f32.mxu1 %vm1611_vm0, %v1610_v0  ;;  %1531 = vmatpush3.msra.mxu1 %v353_v41 }
 0x22b   : > { %1540 = vmatprep.subr.mxu1 %v1610_v0 }
 0x2f8   : > { %v529_v28 = vpop.f32.mrb[0].mxu1 }
 0x2f9   : > { %v1519_v29 = vpop.f32.mrb[1].mxu1 }
 0x2fc   : > { %v607_v30 = vpop.f32.mrb[2].mxu1 }
 0x2fd   : > { %v611_v31 = vsel %vm1699_vm5, %v607_v30, -1e+20  ;;  %v1524_v32 = vpop.f32.mrb[3].mxu1 }
 0x2fe   : > { %v612_v33 = vmul.f32 0.35355338, %v611_v31  ;;  %v1481_v32 = vld [vmem:[%s1819_s5] ss:$0 sm:$0xff] }
 0x300   : > { %v613_v34 = vsel %vm370_vm1, %v612_v33, -inf }
 0x301   : > { %614 = vmax.xlane.f32.xlu0 %v613_v34 }
 0x317   : > { %625 = vrot.lane.b32.xlu0 %v1715_v22, %s1613_s17 }
 0x31b   : > { %849 = vrot.lane.b32.xlu0 %v1681_v1, %s1614_s23 }
 0x31f   : > { %847 = vrot.lane.b32.xlu0 %v1689_v2, %s1614_s23 }
 0x38e   : > { %v615_v35 = vpop.xlane.xlu0 %614 }
 0x38f   : > { %v616_v36 = vsub.f32 %v612_v33, %v615_v35 }
 0x391   : > { %v617_v37 = vmul.f32 1.442695, %v616_v36 }
 0x392   : > { %v626_v40 = vpop.permute.xlu0 %625 }
 0x393   : > { %1588 = vpow2.f32 %v617_v37  ;;  %1526 = vmatpush3.msra.mxu0 %v626_v40 }
 0x394   : > { %1535 = vmatprep.subr.mxu0 %v1610_v0 }
 0x396   : > { %v850_v46 = vpop.permute.xlu0 %849 }
 0x39a   : > { %v848_v49 = vpop.permute.xlu0 %847 }
 0x39d   : > { %v1589_v38 = vpop.eup %1588 }
 0x39e   : > { %v619_v39 = vsel %vm370_vm1, %v1589_v38, 0.0 }
 0x39f   : > { %620 = vadd.xlane.f32.xlu1 %v619_v39 }
 0x3b0   : > { %938 = vrot.lane.b32.xlu1 %v1715_v22, %s1614_s23 }
 0x3b4   : > { %1090 = vrot.lane.b32.xlu1 %v1681_v1, %s1615_s26 }
 0x42c   : > { %v621_v42 = vpop.xlane.xlu1 %620 }
 0x42d   : > { %1590 = vrcp.f32 %v621_v42 }
 0x430   : > { %v939_v60 = vpop.permute.xlu1 %938 }
 0x434   : > { %v1091_v4 = vpop.permute.xlu1 %1090 }
 0x437   : > { %v1591_v43 = vpop.eup %1590 }
 0x438   : > { %v623_v44 = vmul.f32 %v1591_v43, %v1589_v38 }
 0x43a   : > { %1528 = vmatmul.mubr.msk.f32.vlgmr.msra.gmra.mrb[2].mxu0 %vm370_vm1, %v623_v44 }
 0x43b   : > { %1536 = vmatpush3.msra.mxu0 %v352_v45  ;;  %1537 = vmatprep.mubr.msk.f32.mxu0 %vm1611_vm0, %v1610_v0 }
 0x43c   : > { %1545 = vmatprep.subr.mxu0 %v1610_v0 }
 0x43e   : > { %1538 = vmatmul.mubr.msk.f32.vlgmr.msra.gmra.mrb[4].mxu0 %vm370_vm1, %v529_v28 }
 0x43f   : > { %1547 = vmatprep.mubr.msk.f32.mxu0 %vm1611_vm0, %v1610_v0  ;;  %1546 = vmatpush3.msra.mxu0 %v939_v60 }
 0x440   : > { %1555 = vmatprep.subr.mxu0 %v1610_v0 }
 0x50d   : > { %v697_v47 = vpop.f32.mrb[2].mxu0 }
 0x50e   : > { %v1529_v48 = vpop.f32.mrb[3].mxu0  ;;  %1533 = vmatmul.mubr.msk.f32.vlgmr.msra.gmra.mrb[4].mxu1 %vm370_vm1, %v697_v47 }
 0x50f   : > { %1541 = vmatpush3.xpose.msk.msra.mxu1 %vm370_vm1, %v850_v46  ;;  %1542 = vmatprep.mubr.msk.f32.mxu1 %vm1611_vm0, %v1610_v0  ;;  %v1483_v48 = vld [vmem:[%s1821_s7] ss:$0 sm:$0xff] }
 0x510   : > { %1550 = vmatprep.subr.mxu1 %v1610_v0 }
 0x511   : > { %v843_v50 = vpop.f32.mrb[4].mxu0 }
 0x512   : > { %v1539_v51 = vpop.f32.mrb[5].mxu0  ;;  %1543 = vmatmul.mubr.msk.f32.vlgmr.msra.gmra.mrb[6].mxu1 %vm370_vm1, %v848_v49 }
 0x513   : > { %1552 = vmatprep.mubr.msk.f32.mxu1 %vm1611_vm0, %v1610_v0  ;;  %1551 = vmatpush3.msra.mxu1 %v354_v9 }
 0x514   : > { %1560 = vmatprep.subr.mxu1 %v1610_v0 }
 0x5e1   : > { %v770_v52 = vpop.f32.mrb[4].mxu1 }
 0x5e2   : > { %v844_v53 = vadd.f32 %v843_v50, %v770_v52  ;;  %v1534_v54 = vpop.f32.mrb[5].mxu1 }
 0x5e5   : > { %v921_v55 = vpop.f32.mrb[6].mxu1 }
 0x5e6   : > { %v925_v56 = vsel %vm1699_vm5, %v921_v55, -1e+20  ;;  %v1544_v57 = vpop.f32.mrb[7].mxu1 }
 0x5e7   : > { %v926_v58 = vmul.f32 0.35355338, %v925_v56 }
 0x5e9   : > { %v927_v59 = vsel %vm370_vm1, %v926_v58, -inf }
 0x5ea   : > { %928 = vmax.xlane.f32.xlu0 %v927_v59 }
 0x677   : > { %v929_v61 = vpop.xlane.xlu0 %928 }
 0x678   : > { %v930_v62 = vsub.f32 %v926_v58, %v929_v61 }
 0x67a   : > { %v931_v63 = vmul.f32 1.442695, %v930_v62 }
 0x67c   : > { %1592 = vpow2.f32 %v931_v63 }
 0x686   : > { %v1593_v1 = vpop.eup %1592 }
 0x687   : > { %v933_v3 = vsel %vm370_vm1, %v1593_v1, 0.0 }
 0x688   : > { %934 = vadd.xlane.f32.xlu1 %v933_v3 }
 0x699   : > { %1088 = vrot.lane.b32.xlu1 %v1689_v2, %s1615_s26 }
 0x715   : > { %v935_v5 = vpop.xlane.xlu1 %934 }
 0x716   : > { %1594 = vrcp.f32 %v935_v5 }
 0x719   : > { %v1089_v8 = vpop.permute.xlu1 %1088 }
 0x720   : > { %v1595_v6 = vpop.eup %1594 }
 0x721   : > { %v937_v7 = vmul.f32 %v1595_v6, %v1593_v1 }
 0x723   : > { %1548 = vmatmul.mubr.msk.f32.vlgmr.msra.gmra.mrb[6].mxu0 %vm370_vm1, %v937_v7 }
 0x724   : > { %1556 = vmatpush3.xpose.msk.msra.mxu0 %vm370_vm1, %v1091_v4  ;;  %1557 = vmatprep.mubr.msk.f32.mxu0 %vm1611_vm0, %v1610_v0 }
 0x725   : > { %1565 = vmatprep.subr.mxu0 %v1610_v0 }
 0x727   : > { %1558 = vmatmul.mubr.msk.f32.vlgmr.msra.gmra.mrb[8].mxu0 %vm370_vm1, %v1089_v8 }
 0x728   : > { %1567 = vmatprep.mubr.msk.f32.mxu0 %vm1611_vm0, %v1610_v0  ;;  %1566 = vmatpush3.msra.mxu0 %v355_v11 }
 0x7f6   : > { %v1010_v10 = vpop.f32.mrb[6].mxu0 }
 0x7f7   : > { %v1549_v12 = vpop.f32.mrb[7].mxu0  ;;  %1553 = vmatmul.mubr.msk.f32.vlgmr.msra.gmra.mrb[8].mxu1 %vm370_vm1, %v1010_v10 }
 0x7f8   : > { %1562 = vmatprep.mubr.msk.f32.mxu1 %vm1611_vm0, %v1610_v0 }
 0x7fa   : > { %v1162_v13 = vpop.f32.mrb[8].mxu0 }
 0x7fb   : > { %v1166_v14 = vsel %vm1699_vm5, %v1162_v13, -1e+20  ;;  %v1559_v15 = vpop.f32.mrb[9].mxu0 }
 0x7fc   : > { %v1167_v16 = vmul.f32 0.35355338, %v1166_v14 }
 0x7fe   : > { %v1168_v17 = vsel %vm370_vm1, %v1167_v16, -inf }
 0x7ff   : > { %1169 = vmax.xlane.f32.xlu0 %v1168_v17 }
 0x815   : > { %1179 = vrot.lane.b32.xlu0 %v1715_v22, %s1615_s26 }
 0x88c   : > { %v1170_v18 = vpop.xlane.xlu0 %1169 }
 0x88d   : > { %v1171_v19 = vsub.f32 %v1167_v16, %v1170_v18 }
 0x88f   : > { %v1172_v20 = vmul.f32 1.442695, %v1171_v19 }
 0x890   : > { %v1180_v0 = vpop.permute.xlu0 %1179 }
 0x891   : > { %1596 = vpow2.f32 %v1172_v20  ;;  %1561 = vmatpush3.msra.mxu1 %v1180_v0 }
 0x89b   : > { %v1597_v21 = vpop.eup %1596 }
 0x89c   : > { %v1174_v23 = vsel %vm370_vm1, %v1597_v21, 0.0 }
 0x89d   : > { %1175 = vadd.xlane.f32.xlu1 %v1174_v23 }
 0x8ca   : > { %v1083_v24 = vpop.f32.mrb[8].mxu1 }
 0x8cb   : > { %v1087_v25 = vadd.f32 %v1083_v24, %v844_v53  ;;  %v1554_v26 = vpop.f32.mrb[9].mxu1 }
 0x92a   : > { %v1176_v27 = vpop.xlane.xlu1 %1175 }
 0x92b   : > { %1598 = vrcp.f32 %v1176_v27 }
 0x935   : > { %v1599_v22 = vpop.eup %1598 }
 0x936   : > { %v1178_v28 = vmul.f32 %v1599_v22, %v1597_v21 }
 0x938   : > { %1563 = vmatmul.mubr.msk.f32.vlgmr.msra.gmra.mrb[10].mxu1 %vm370_vm1, %v1178_v28 }
 0xa0b   : > { %v1251_v29 = vpop.f32.mrb[10].mxu1 }
 0xa0c   : > { %v1564_v30 = vpop.f32.mrb[11].mxu1  ;;  %1568 = vmatmul.mubr.msk.f32.vlgmr.msra.gmra.mrb[10].mxu0 %vm370_vm1, %v1251_v29 }
 0xadf   : > { %v1324_v31 = vpop.f32.mrb[10].mxu0 }
 0xae0   : > { %v1328_v33 = vadd.f32 %v1324_v31, %v1087_v25  ;;  %v1569_v34 = vpop.f32.mrb[11].mxu0 }
 0xae2   : > { %v1336_v35 = vadd.f32 %v1481_v32, %v1328_v33 }
 0xae4   : > { %v1337_v36 = vadd.f32 %v1336_v35, %v1689_v2  ;;  %v1482_v2 = vld [vmem:[%s1820_s6] ss:$0 sm:$0xff] }
 0xae6   : > { %v1339_v37 = vsel %vm1338_vm6, %v1337_v36, 0.0 }
 0xae7   : > { %1340 = vadd.xlane.f32.xlu0 %v1339_v37 }
 0xb74   : > { %v1341_v38 = vpop.xlane.xlu0 %1340 }
 0xb75   : > { %v1343_v39 = vmul.f32 0.03125, %v1341_v38 }
 0xb77   : > { %v1344_v40 = vsub.f32 %v1337_v36, %v1343_v39 }
 0xb79   : > { %v1345_v41 = vmul.f32 %v1344_v40, %v1344_v40 }
 0xb7b   : > { %v1346_v42 = vsel %vm1338_vm6, %v1345_v41, 0.0 }
 0xb7c   : > { %1347 = vadd.xlane.f32.xlu1 %v1346_v42 }
 0xc09   : > { %v1348_v43 = vpop.xlane.xlu1 %1347 }
 0xc0a   : > { %v1349_v44 = vmul.f32 0.03125, %v1348_v43 }
 0xc0c   : > { %v1350_v45 = vadd.f32 1e-05, %v1349_v44 }
 0xc0e   : > { %1600 = vrsqrt.f32 %v1350_v45 }
 0xc18   : > { %v1601_v46 = vpop.eup %1600 }
 0xc19   : > { %v1352_v47 = vmul.f32 %v1601_v46, %v1344_v40 }
 0xc1b   : > { %v1360_v49 = vmul.f32 %v1482_v2, %v1352_v47 }
 0xc1d   : > { %v1368_v50 = vadd.f32 %v1483_v48, %v1360_v49 }
 0xc1f   : > { %1369 = vst.msk [vmem:[%s348_s19] sm:$0xff] %vm1338_vm6, %v1368_v50 }
 0xc20 PF: > { %s18_s27 = sadd.s32 1, %s1608_s27  }
 0xc21   : > { %p15_p4 = scmp.ge.s32.totalorder %s18_s27, 4  }
 0xc23   :  { %17 = sbr.rel (!%p15_p4) target bundleno = 1 (0x1), region = 91 }

// kernel: transformer_forward.11
= control target key start
LH: loop header
LB: loop body
LE: loop exit
PB: predicated region body
PF: predicated region fallthrough
CT: control target
= control target key end

     0   :  { %s1655_s27 = smov 0   ;;  %s1807_s0 = inlined_call_operand.vmem [shape: f32[2,8,32], index: 0, kind: input, shape index: {}, may-alias: {0,1,2}]   ;;  %s1808_s1 = inlined_call_operand.vmem [shape: f32[2,8,32], index: 1, kind: input, shape index: {}, may-alias: {0,1,2}]   ;;  %s1809_s2 = inlined_call_operand.vmem [shape: f32[2,8,32], index: 2, kind: input, shape index: {}, may-alias: {0,1,2}]   ;;  %s1810_s3 = inlined_call_operand.vmem [shape: f32[2,1,8], index: 3, kind: input, shape index: {}]   ;;  %s1811_s4 = inlined_call_operand.vmem [shape: f32[32,32], index: 4, kind: input, shape index: {}]   ;;  %s1812_s5 = inlined_call_operand.vmem [shape: f32[1,32], index: 5, kind: input, shape index: {}]   ;;  %s1813_s6 = inlined_call_operand.vmem [shape: f32[1,32], index: 6, kind: input, shape index: {}]   ;;  %s1814_s7 = inlined_call_operand.vmem [shape: f32[1,32], index: 7, kind: input, shape index: {}]   ;;  %s1815_s8 = inlined_call_operand.vmem [shape: f32[2,8,32], index: 8, kind: output, shape index: {}]  }
   0x1 LB: > { %s1450_s28 = sadd.s32 4294967295, %s1602_s27   ;;  %p1454_p0 = scmp.ge.s32.totalorder %s1602_s27, 1  ;;  %s1602_s27 = sphi %s1655_s27, %s18_s27  }
   0x2   : > { %p287_p1 = scmp.lt.s32.totalorder %s1602_s27, 3 }
   0x4   : > { %p288_p2 = pnand %p1454_p0, %p287_p1 }
   0x5   : > { %p330_p3 = scmp.lt.s32.totalorder (!%p288_p2), %s1450_s28, 1  ;;  %v1604_v0 = vmov (!%p288_p2), 0.0   ;;  %vm1605_vm0 = vmmov (!%p288_p2), 0   ;;  %vm364_vm1 = vcmask (!%p288_p2), 64512   ;;  %v359_v3 = vlaneseq (!%p288_p2)  ;;  %s1607_s17 = smov (!%p288_p2), 120   ;;  %v353_v39 = vld [vmem:[%s1811_s4 + $0x8] sm:$0xff] (!%p288_p2) }
   0x6   : > { %291 = sbr.rel (%p288_p2) target bundleno = 3104 (0xc20), region = 52  ;;  %1504 = vmatprep.subr.mxu0 (!%p288_p2), %v1604_v0  ;;  %1506 = vmatprep.mubr.msk.f32.mxu0 (!%p288_p2), %vm1605_vm0, %v1604_v0  ;;  %v1606_v7 = vmov (!%p288_p2), 0   ;;  %s1608_s23 = smov (!%p288_p2), 112   ;;  %v352_v43 = vld [vmem:[%s1811_s4] sm:$0xff] (!%p288_p2)  ;;  %vm1332_vm4 = vcmask (!%p288_p2), 261120  }
   0x7   : > { %1509 = vmatprep.subr.mxu1 (!%p288_p2), %v1604_v0  ;;  %1511 = vmatprep.mubr.msk.f32.mxu1 (!%p288_p2), %vm1605_vm0, %v1604_v0  ;;  %v360_v5 = vshrl.u32 (!%p288_p2), %v359_v3, 7  ;;  %s1609_s26 = smov (!%p288_p2), 104  }
   0x9   : > { %v361_v6 = vsub.s32 (!%p288_p2), 0, %v360_v5 }
   0xd   : > { %s1817_s28 = smov (!%p330_p3, %s1450_s28), 1 }
   0xe   : > { %s1669_s29 = sshll.u32 %s1817_s28, 3  ;;  %s344_s16 = scalar_lea.vmem %s1810_s3, %s1817_s28 }
   0xf   : > { %s337_s10 = scalar_lea.vmem %s1808_s1, %s1669_s29  ;;  %s333_s13 = scalar_lea.vmem %s1807_s0, %s1669_s29  ;;  %v356_v4 = vld [vmem:[%s344_s16] sm:$0x1] }
  0x10   : > { %v1675_v1 = vld [vmem:[%s337_s10] sm:$0xff]  ;;  %vm357_vm2 = vcmp.ne.f32.partialorder %v356_v4, 0.0  ;;  %s341_s20 = scalar_lea.vmem %s1809_s2, %s1669_s29  ;;  %s348_s19 = scalar_lea.vmem %s1815_s8, %s1669_s29 }
  0x11   : > { %1505 = vmatpush3.xpose.msk.msra.mxu0 %vm364_vm1, %v1675_v1  ;;  %v1683_v2 = vld [vmem:[%s333_s13] sm:$0xff]  ;;  %v358_v8 = vsel %vm357_vm2, 1, %v1606_v7  ;;  %529 = vrot.lane.b32.xlu1 %v1675_v1, %s1607_s17  ;;  %v354_v7 = vld [vmem:[%s1811_s4 + $0x10] sm:$0xff] }
  0x12   : > { %1519 = vmatprep.subr.mxu0 %v1604_v0  ;;  %v1693_v9 = vrot.slane %v358_v8, %v361_v6  ;;  %v1708_v20 = vld [vmem:[%s341_s20] sm:$0xff] }
  0x13   : > { %1510 = vmatpush3.msra.mxu1 %v1708_v20 }
  0x14   : > { %1507 = vmatmul.mubr.msk.f32.vlgmr.msra.gmra.mrb[0].mxu0 %vm364_vm1, %v1683_v2  ;;  %vm363_vm3 = vcmp.eq.s32.totalorder %v1693_v9, 1  ;;  %1514 = vmatprep.subr.mxu1 %v1604_v0  ;;  %v355_v9 = vld [vmem:[%s1811_s4 + $0x18] sm:$0xff] }
  0x15   : > { %1521 = vmatprep.mubr.msk.f32.mxu0 %vm1605_vm0, %v1604_v0  ;;  %527 = vrot.lane.b32.xlu1 %v1683_v2, %s1607_s17 }
  0x83   : > { %v530_v22 = vpop.permute.xlu1 %529 }
  0x87   : > { %v528_v25 = vpop.permute.xlu1 %527 }
  0xe7   : > { %v437_v10 = vpop.f32.mrb[0].mxu0 }
  0xe8   : > { %v441_v11 = vsel %vm363_vm3, %v437_v10, -1e+20  ;;  %v1508_v12 = vpop.f32.mrb[1].mxu0 }
  0xe9   : > { %v442_v13 = vmul.f32 0.35355338, %v441_v11 }
  0xeb   : > { %v443_v14 = vsel %vm364_vm1, %v442_v13, -inf }
  0xec   : > { %444 = vmax.xlane.f32.xlu0 %v443_v14 }
 0x179   : > { %v445_v15 = vpop.xlane.xlu0 %444 }
 0x17a   : > { %v446_v16 = vsub.f32 %v442_v13, %v445_v15 }
 0x17c   : > { %v447_v17 = vmul.f32 1.442695, %v446_v16 }
 0x17e   : > { %1578 = vpow2.f32 %v447_v17 }
 0x188   : > { %v1579_v18 = vpop.eup %1578 }
 0x189   : > { %v449_v19 = vsel %vm364_vm1, %v1579_v18, 0.0 }
 0x18a   : > { %450 = vadd.xlane.f32.xlu0 %v449_v19 }
 0x217   : > { %v451_v21 = vpop.xlane.xlu0 %450 }
 0x218   : > { %1580 = vrcp.f32 %v451_v21 }
 0x222   : > { %v1581_v23 = vpop.eup %1580 }
 0x223   : > { %v453_v24 = vmul.f32 %v1581_v23, %v1579_v18 }
 0x225   : > { %1512 = vmatmul.mubr.msk.f32.vlgmr.msra.gmra.mrb[0].mxu1 %vm364_vm1, %v453_v24 }
 0x226   : > { %1515 = vmatpush3.xpose.msk.msra.mxu1 %vm364_vm1, %v530_v22  ;;  %1516 = vmatprep.mubr.msk.f32.mxu1 %vm1605_vm0, %v1604_v0 }
 0x227   : > { %1524 = vmatprep.subr.mxu1 %v1604_v0 }
 0x229   : > { %1517 = vmatmul.mubr.msk.f32.vlgmr.msra.gmra.mrb[2].mxu1 %vm364_vm1, %v528_v25 }
 0x22a   : > { %1526 = vmatprep.mubr.msk.f32.mxu1 %vm1605_vm0, %v1604_v0  ;;  %1525 = vmatpush3.msra.mxu1 %v353_v39 }
 0x22b   : > { %1534 = vmatprep.subr.mxu1 %v1604_v0 }
 0x2f8   : > { %v523_v26 = vpop.f32.mrb[0].mxu1 }
 0x2f9   : > { %v1513_v27 = vpop.f32.mrb[1].mxu1 }
 0x2fc   : > { %v601_v28 = vpop.f32.mrb[2].mxu1 }
 0x2fd   : > { %v605_v29 = vsel %vm363_vm3, %v601_v28, -1e+20  ;;  %v1518_v30 = vpop.f32.mrb[3].mxu1 }
 0x2fe   : > { %v606_v31 = vmul.f32 0.35355338, %v605_v29  ;;  %v1475_v30 = vld [vmem:[%s1812_s5] ss:$0 sm:$0xff] }
 0x300   : > { %v607_v32 = vsel %vm364_vm1, %v606_v31, -inf }
 0x301   : > { %608 = vmax.xlane.f32.xlu0 %v607_v32 }
 0x317   : > { %619 = vrot.lane.b32.xlu0 %v1708_v20, %s1607_s17 }
 0x31b   : > { %843 = vrot.lane.b32.xlu0 %v1675_v1, %s1608_s23 }
 0x31f   : > { %841 = vrot.lane.b32.xlu0 %v1683_v2, %s1608_s23 }
 0x38e   : > { %v609_v33 = vpop.xlane.xlu0 %608 }
 0x38f   : > { %v610_v34 = vsub.f32 %v606_v31, %v609_v33 }
 0x391   : > { %v611_v35 = vmul.f32 1.442695, %v610_v34 }
 0x392   : > { %v620_v38 = vpop.permute.xlu0 %619 }
 0x393   : > { %1582 = vpow2.f32 %v611_v35  ;;  %1520 = vmatpush3.msra.mxu0 %v620_v38 }
 0x394   : > { %1529 = vmatprep.subr.mxu0 %v1604_v0 }
 0x396   : > { %v844_v44 = vpop.permute.xlu0 %843 }
 0x39a   : > { %v842_v47 = vpop.permute.xlu0 %841 }
 0x39d   : > { %v1583_v36 = vpop.eup %1582 }
 0x39e   : > { %v613_v37 = vsel %vm364_vm1, %v1583_v36, 0.0 }
 0x39f   : > { %614 = vadd.xlane.f32.xlu1 %v613_v37 }
 0x3b0   : > { %932 = vrot.lane.b32.xlu1 %v1708_v20, %s1608_s23 }
 0x3b4   : > { %1084 = vrot.lane.b32.xlu1 %v1675_v1, %s1609_s26 }
 0x42c   : > { %v615_v40 = vpop.xlane.xlu1 %614 }
 0x42d   : > { %1584 = vrcp.f32 %v615_v40 }
 0x430   : > { %v933_v58 = vpop.permute.xlu1 %932 }
 0x434   : > { %v1085_v1 = vpop.permute.xlu1 %1084 }
 0x437   : > { %v1585_v41 = vpop.eup %1584 }
 0x438   : > { %v617_v42 = vmul.f32 %v1585_v41, %v1583_v36 }
 0x43a   : > { %1522 = vmatmul.mubr.msk.f32.vlgmr.msra.gmra.mrb[2].mxu0 %vm364_vm1, %v617_v42 }
 0x43b   : > { %1530 = vmatpush3.msra.mxu0 %v352_v43  ;;  %1531 = vmatprep.mubr.msk.f32.mxu0 %vm1605_vm0, %v1604_v0 }
 0x43c   : > { %1539 = vmatprep.subr.mxu0 %v1604_v0 }
 0x43e   : > { %1532 = vmatmul.mubr.msk.f32.vlgmr.msra.gmra.mrb[4].mxu0 %vm364_vm1, %v523_v26 }
 0x43f   : > { %1541 = vmatprep.mubr.msk.f32.mxu0 %vm1605_vm0, %v1604_v0  ;;  %1540 = vmatpush3.msra.mxu0 %v933_v58 }
 0x440   : > { %1549 = vmatprep.subr.mxu0 %v1604_v0 }
 0x50d   : > { %v691_v45 = vpop.f32.mrb[2].mxu0 }
 0x50e   : > { %v1523_v46 = vpop.f32.mrb[3].mxu0  ;;  %1527 = vmatmul.mubr.msk.f32.vlgmr.msra.gmra.mrb[4].mxu1 %vm364_vm1, %v691_v45 }
 0x50f   : > { %1535 = vmatpush3.xpose.msk.msra.mxu1 %vm364_vm1, %v844_v44  ;;  %1536 = vmatprep.mubr.msk.f32.mxu1 %vm1605_vm0, %v1604_v0  ;;  %v1477_v46 = vld [vmem:[%s1814_s7] ss:$0 sm:$0xff] }
 0x510   : > { %1544 = vmatprep.subr.mxu1 %v1604_v0 }
 0x511   : > { %v837_v48 = vpop.f32.mrb[4].mxu0 }
 0x512   : > { %v1533_v49 = vpop.f32.mrb[5].mxu0  ;;  %1537 = vmatmul.mubr.msk.f32.vlgmr.msra.gmra.mrb[6].mxu1 %vm364_vm1, %v842_v47 }
 0x513   : > { %1546 = vmatprep.mubr.msk.f32.mxu1 %vm1605_vm0, %v1604_v0  ;;  %1545 = vmatpush3.msra.mxu1 %v354_v7 }
 0x514   : > { %1554 = vmatprep.subr.mxu1 %v1604_v0 }
 0x5e1   : > { %v764_v50 = vpop.f32.mrb[4].mxu1 }
 0x5e2   : > { %v838_v51 = vadd.f32 %v837_v48, %v764_v50  ;;  %v1528_v52 = vpop.f32.mrb[5].mxu1 }
 0x5e5   : > { %v915_v53 = vpop.f32.mrb[6].mxu1 }
 0x5e6   : > { %v919_v54 = vsel %vm363_vm3, %v915_v53, -1e+20  ;;  %v1538_v55 = vpop.f32.mrb[7].mxu1 }
 0x5e7   : > { %v920_v56 = vmul.f32 0.35355338, %v919_v54 }
 0x5e9   : > { %v921_v57 = vsel %vm364_vm1, %v920_v56, -inf }
 0x5ea   : > { %922 = vmax.xlane.f32.xlu0 %v921_v57 }
 0x677   : > { %v923_v59 = vpop.xlane.xlu0 %922 }
 0x678   : > { %v924_v60 = vsub.f32 %v920_v56, %v923_v59 }
 0x67a   : > { %v925_v61 = vmul.f32 1.442695, %v924_v60 }
 0x67c   : > { %1586 = vpow2.f32 %v925_v61 }
 0x686   : > { %v1587_v62 = vpop.eup %1586 }
 0x687   : > { %v927_v63 = vsel %vm364_vm1, %v1587_v62, 0.0 }
 0x688   : > { %928 = vadd.xlane.f32.xlu1 %v927_v63 }
 0x699   : > { %1082 = vrot.lane.b32.xlu1 %v1683_v2, %s1609_s26 }
 0x715   : > { %v929_v3 = vpop.xlane.xlu1 %928 }
 0x716   : > { %1588 = vrcp.f32 %v929_v3 }
 0x719   : > { %v1083_v6 = vpop.permute.xlu1 %1082 }
 0x720   : > { %v1589_v4 = vpop.eup %1588 }
 0x721   : > { %v931_v5 = vmul.f32 %v1589_v4, %v1587_v62 }
 0x723   : > { %1542 = vmatmul.mubr.msk.f32.vlgmr.msra.gmra.mrb[6].mxu0 %vm364_vm1, %v931_v5 }
 0x724   : > { %1550 = vmatpush3.xpose.msk.msra.mxu0 %vm364_vm1, %v1085_v1  ;;  %1551 = vmatprep.mubr.msk.f32.mxu0 %vm1605_vm0, %v1604_v0 }
 0x725   : > { %1559 = vmatprep.subr.mxu0 %v1604_v0 }
 0x727   : > { %1552 = vmatmul.mubr.msk.f32.vlgmr.msra.gmra.mrb[8].mxu0 %vm364_vm1, %v1083_v6 }
 0x728   : > { %1561 = vmatprep.mubr.msk.f32.mxu0 %vm1605_vm0, %v1604_v0  ;;  %1560 = vmatpush3.msra.mxu0 %v355_v9 }
 0x7f6   : > { %v1004_v8 = vpop.f32.mrb[6].mxu0 }
 0x7f7   : > { %v1543_v10 = vpop.f32.mrb[7].mxu0  ;;  %1547 = vmatmul.mubr.msk.f32.vlgmr.msra.gmra.mrb[8].mxu1 %vm364_vm1, %v1004_v8 }
 0x7f8   : > { %1556 = vmatprep.mubr.msk.f32.mxu1 %vm1605_vm0, %v1604_v0 }
 0x7fa   : > { %v1156_v11 = vpop.f32.mrb[8].mxu0 }
 0x7fb   : > { %v1160_v12 = vsel %vm363_vm3, %v1156_v11, -1e+20  ;;  %v1553_v13 = vpop.f32.mrb[9].mxu0 }
 0x7fc   : > { %v1161_v14 = vmul.f32 0.35355338, %v1160_v12 }
 0x7fe   : > { %v1162_v15 = vsel %vm364_vm1, %v1161_v14, -inf }
 0x7ff   : > { %1163 = vmax.xlane.f32.xlu0 %v1162_v15 }
 0x815   : > { %1173 = vrot.lane.b32.xlu0 %v1708_v20, %s1609_s26 }
 0x88c   : > { %v1164_v16 = vpop.xlane.xlu0 %1163 }
 0x88d   : > { %v1165_v17 = vsub.f32 %v1161_v14, %v1164_v16 }
 0x88f   : > { %v1166_v18 = vmul.f32 1.442695, %v1165_v17 }
 0x890   : > { %v1174_v0 = vpop.permute.xlu0 %1173 }
 0x891   : > { %1590 = vpow2.f32 %v1166_v18  ;;  %1555 = vmatpush3.msra.mxu1 %v1174_v0 }
 0x89b   : > { %v1591_v19 = vpop.eup %1590 }
 0x89c   : > { %v1168_v21 = vsel %vm364_vm1, %v1591_v19, 0.0 }
 0x89d   : > { %1169 = vadd.xlane.f32.xlu1 %v1168_v21 }
 0x8ca   : > { %v1077_v22 = vpop.f32.mrb[8].mxu1 }
 0x8cb   : > { %v1081_v23 = vadd.f32 %v1077_v22, %v838_v51  ;;  %v1548_v24 = vpop.f32.mrb[9].mxu1 }
 0x92a   : > { %v1170_v25 = vpop.xlane.xlu1 %1169 }
 0x92b   : > { %1592 = vrcp.f32 %v1170_v25 }
 0x935   : > { %v1593_v20 = vpop.eup %1592 }
 0x936   : > { %v1172_v26 = vmul.f32 %v1593_v20, %v1591_v19 }
 0x938   : > { %1557 = vmatmul.mubr.msk.f32.vlgmr.msra.gmra.mrb[10].mxu1 %vm364_vm1, %v1172_v26 }
 0xa0b   : > { %v1245_v27 = vpop.f32.mrb[10].mxu1 }
 0xa0c   : > { %v1558_v28 = vpop.f32.mrb[11].mxu1  ;;  %1562 = vmatmul.mubr.msk.f32.vlgmr.msra.gmra.mrb[10].mxu0 %vm364_vm1, %v1245_v27 }
 0xadf   : > { %v1318_v29 = vpop.f32.mrb[10].mxu0 }
 0xae0   : > { %v1322_v31 = vadd.f32 %v1318_v29, %v1081_v23  ;;  %v1563_v32 = vpop.f32.mrb[11].mxu0 }
 0xae2   : > { %v1330_v33 = vadd.f32 %v1475_v30, %v1322_v31 }
 0xae4   : > { %v1331_v34 = vadd.f32 %v1330_v33, %v1683_v2  ;;  %v1476_v2 = vld [vmem:[%s1813_s6] ss:$0 sm:$0xff] }
 0xae6   : > { %v1333_v35 = vsel %vm1332_vm4, %v1331_v34, 0.0 }
 0xae7   : > { %1334 = vadd.xlane.f32.xlu0 %v1333_v35 }
 0xb74   : > { %v1335_v36 = vpop.xlane.xlu0 %1334 }
 0xb75   : > { %v1337_v37 = vmul.f32 0.03125, %v1335_v36 }
 0xb77   : > { %v1338_v38 = vsub.f32 %v1331_v34, %v1337_v37 }
 0xb79   : > { %v1339_v39 = vmul.f32 %v1338_v38, %v1338_v38 }
 0xb7b   : > { %v1340_v40 = vsel %vm1332_vm4, %v1339_v39, 0.0 }
 0xb7c   : > { %1341 = vadd.xlane.f32.xlu1 %v1340_v40 }
 0xc09   : > { %v1342_v41 = vpop.xlane.xlu1 %1341 }
 0xc0a   : > { %v1343_v42 = vmul.f32 0.03125, %v1342_v41 }
 0xc0c   : > { %v1344_v43 = vadd.f32 1e-05, %v1343_v42 }
 0xc0e   : > { %1594 = vrsqrt.f32 %v1344_v43 }
 0xc18   : > { %v1595_v44 = vpop.eup %1594 }
 0xc19   : > { %v1346_v45 = vmul.f32 %v1595_v44, %v1338_v38 }
 0xc1b   : > { %v1354_v47 = vmul.f32 %v1476_v2, %v1346_v45 }
 0xc1d   : > { %v1362_v48 = vadd.f32 %v1477_v46, %v1354_v47 }
 0xc1f   : > { %1363 = vst.msk [vmem:[%s348_s19] sm:$0xff] %vm1332_vm4, %v1362_v48 }
 0xc20 PF: > { %s18_s27 = sadd.s32 1, %s1602_s27  }
 0xc21   : > { %p15_p4 = scmp.ge.s32.totalorder %s18_s27, 4  }
 0xc23   :  { %17 = sbr.rel (!%p15_p4) target bundleno = 1 (0x1), region = 91 }

</bundles_post_ra>
